<compile_context>
chip_gen: v7x
topology: tpu7x:2x2x1
jax: 0.10.0
libtpu: 0.0.40
codegen_flags: <defaults>
</compile_context>

<pallas_src>
import math
import jax
import jax.numpy as jnp
from jax import lax
from jax.experimental import pallas as pl
from jax.experimental.pallas import tpu as pltpu  # noqa: F401  (kept for TPU backend use)

# ---- problem sizes (small, consistent with the module) ----
B = 2          # batch
SV = 8         # visual sequence length
ST = 8         # text sequence length
S = SV + ST    # concatenated sequence length (16)
D = 32         # d_model
H = 4          # heads
DK = D // H    # per-head dim (8)
DFF = 4 * D    # feed-forward hidden (128)
BS = B * S     # folded batch*seq rows (32)
LN_EPS = 1e-5  # torch.nn.LayerNorm default


def _encoder_kernel(v_ref, t_ref, w_ref, b_ref, o_ref):
    f32 = jnp.float32
    bf16 = jnp.bfloat16

    # ----- fused concat: (B*S, D) slab, row order [v0, t0, v1, t1] -----
    rows = []
    for b in range(B):                                   # static unroll, sublane-aligned
        rows.append(v_ref[b])                            # (SV, D)
        rows.append(t_ref[b])                            # (ST, D)
    x = jnp.concatenate(rows, axis=0).astype(f32)        # (BS, D) = (32, 32)

    # ----- unpack bias slab: one (4, 128) f32 load, static slices -----
    b_all = b_ref[...]
    b_qk       = b_all[0:1, 0:2 * D]                     # [bq | bk]          (1, 64)
    b_f1       = b_all[1:2, :]                           # fc1 bias           (1, 128)
    gamma      = b_all[2:3, 0:D]                         # LN gamma           (1, 32)
    beta       = b_all[2:3, D:2 * D]                     # LN beta            (1, 32)
    b_attn_out = b_all[2:3, 2 * D:3 * D]                 # bv @ Wo + bo       (1, 32)
    b_f2       = b_all[3:4, 0:D]                         # fc2 bias           (1, 32)

    # ----- LayerNorm (norm_1), all rows at once, f32 -----
    mean = jnp.mean(x, axis=-1, keepdims=True)
    var = jnp.mean((x - mean) ** 2, axis=-1, keepdims=True)
    z = (x - mean) * lax.rsqrt(var + LN_EPS) * gamma + beta
    z_bf = z.astype(bf16)

    # ----- fused projections: two MXU pushes, bf16 operands, f32 accumulate -----
    # w_ref[0] = [Wq | Wk | 0 | 0]   -> qk lanes [q | k | junk]
    # w_ref[1] = [Wv_h @ Wo_h]_h     -> vw lanes h*D:(h+1)*D = (V @ Wo) contribution of head h
    qk = jnp.dot(z_bf, w_ref[0], preferred_element_type=f32)     # (32, 128)
    vw = jnp.dot(z_bf, w_ref[1], preferred_element_type=f32)     # (32, 128)
    qk = qk[:, 0:2 * D] + b_qk                                    # (32, 64)
    q = qk[:, 0:D]                                                # (32, 32)
    k = qk[:, D:2 * D]                                            # (32, 32)

    # per-head lane masks over the D lanes (hoisted, exact 0/1 in f32)
    lane = lax.broadcasted_iota(jnp.int32, (1, D), 1)
    masks = [((lane >= h * DK) & (lane < (h + 1) * DK)).astype(f32) for h in range(H)]
    scale = 1.0 / math.sqrt(DK)

    attn_rows = []
    for b in range(B):                                            # static unroll (B = 2)
        qb = q[b * S:(b + 1) * S, :]                              # (16, 32)
        kb = k[b * S:(b + 1) * S, :]                              # (16, 32)
        # sublane-stack of per-head masked keys: row h*S+j = k_b[j] * mask_h   (64, 32)
        km = jnp.concatenate([kb * masks[h] for h in range(H)], axis=0)
        # scores_b[i, h*S+j] = sum_{d in head h} q_b[i,d] * k_b[j,d]  -> lane-dense (16, 64)
        scores = lax.dot_general(
            qb.astype(bf16), km.astype(bf16),
            (((1,), (1,)), ((), ())), preferred_element_type=f32) * scale

        # segmented softmax over 16-lane (per-head) groups; exact division (f32)
        segs = []
        for h in range(H):
            s_h = scores[:, h * S:(h + 1) * S]
            m_h = jnp.max(s_h, axis=-1, keepdims=True)
            e_h = jnp.exp(s_h - m_h)
            segs.append(e_h / jnp.sum(e_h, axis=-1, keepdims=True))
        p = jnp.concatenate(segs, axis=-1).astype(bf16)           # (16, 64)

        # sublane-stack of per-head (V @ Wo_h) blocks for this batch: (H*S, D) = (64, 32)
        vwb = vw[b * S:(b + 1) * S, :]                            # (16, 128)
        vws = jnp.concatenate([vwb[:, h * D:(h + 1) * D] for h in range(H)],
                              axis=0).astype(bf16)
        # single PV contraction per batch: head accumulation happens inside the MXU
        attn_rows.append(jnp.dot(p, vws, preferred_element_type=f32))   # (16, 32)

    attn = jnp.concatenate(attn_rows, axis=0) + b_attn_out        # (32, 32)

    # ----- residual (dropout_1 identity) + ff2 = fc2(gelu(fc1(.))) -----
    h1 = x + attn                                                 # (32, 32)
    f = jnp.dot(h1.astype(bf16), w_ref[2], preferred_element_type=f32) + b_f1   # (32, 128)
    f = f * 0.5 * (1.0 + lax.erf(f * (1.0 / math.sqrt(2.0))))     # exact erf-gelu, f32
    out = lax.dot_general(                                        # w_ref[3] = W_fc2^T
        f.astype(bf16), w_ref[3],
        (((1,), (1,)), ((), ())), preferred_element_type=f32) + b_f2             # (32, 32)

    o_ref[...] = out.astype(o_ref.dtype)                          # single 2-D store


def pack_params(params):
    """One-time wrapper-side repack: 14 small tensors -> one weight slab + one bias slab."""
    wq, wk, wv, wo = params["wq"], params["wk"], params["wv"], params["wo"]
    zeros_w = jnp.zeros((D, 2 * D), jnp.float32)
    w_qk = jnp.concatenate([wq, wk, zeros_w], axis=1)                          # (D, 4D)
    # fused per-head value/output projection: Wvo_h = Wv[:, h] @ Wo[h, :]
    w_vo = jnp.concatenate(
        [wv[:, h * DK:(h + 1) * DK] @ wo[h * DK:(h + 1) * DK, :] for h in range(H)],
        axis=1)                                                                # (D, 4D)
    w_pack = jnp.stack([w_qk, w_vo, params["w_fc1"], params["w_fc2"].T],
                       axis=0).astype(jnp.bfloat16)                            # (4, D, 4D)

    b_attn_out = params["bv"] @ wo + params["bo"]                              # (1, D)
    zd = jnp.zeros((1, D), jnp.float32)
    b0 = jnp.concatenate([params["bq"], params["bk"], zd, zd], axis=1)         # (1, 128)
    b1 = params["b_fc1"]                                                       # (1, 128)
    b2 = jnp.concatenate([params["ln1_gamma"], params["ln1_beta"], b_attn_out, zd], axis=1)
    b3 = jnp.concatenate([params["b_fc2"], zd, zd, zd], axis=1)                # (1, 128)
    b_pack = jnp.concatenate([b0, b1, b2, b3], axis=0)                         # (4, 128) f32
    return w_pack, b_pack


def base_encoder_forward(v_feat, t_feat, w_pack, b_pack):
    # No grid: single invocation, whole working set (<100 KB) resident in VMEM,
    # concat fused in-kernel, batch folded into rows, 4 input DMAs total.
    cost = pl.CostEstimate(flops=1_310_720, transcendentals=6_176, bytes_accessed=43_008)
    out2d = pl.pallas_call(
        _encoder_kernel,
        out_shape=jax.ShapeDtypeStruct((BS, D), jnp.float32),
        cost_estimate=cost,
    )(v_feat, t_feat, w_pack, b_pack)
    return out2d.reshape(B, S, D)   # leading-dim reshape only (free)


def init_params(key):
    # deterministic synthetic parameters; linear weights stored in (in, out) layout
    # (i.e. already-transposed relative to torch.nn.Linear's (out, in))
    ks = jax.random.split(key, 16)
    u = lambda k, shape, fan_in: jax.random.uniform(
        k, shape, jnp.float32, -1.0 / math.sqrt(fan_in), 1.0 / math.sqrt(fan_in))
    params = {
        "ln1_gamma": jnp.ones((1, D), jnp.float32),
        "ln1_beta": jnp.zeros((1, D), jnp.float32),
        "wq": u(ks[0], (D, D), D),   "bq": u(ks[1], (1, D), D),
        "wk": u(ks[2], (D, D), D),   "bk": u(ks[3], (1, D), D),
        "wv": u(ks[4], (D, D), D),   "bv": u(ks[5], (1, D), D),
        "wo": u(ks[6], (D, D), D),   "bo": u(ks[7], (1, D), D),
        "w_fc1": u(ks[8], (D, DFF), D),    "b_fc1": u(ks[9], (1, DFF), D),
        "w_fc2": u(ks[10], (DFF, D), DFF), "b_fc2": u(ks[11], (1, D), DFF),
    }
    return params


if __name__ == "__main__":
    key = jax.random.PRNGKey(0)
    k_v, k_t, k_p = jax.random.split(key, 3)
    v_feat = jax.random.normal(k_v, (B, SV, D), jnp.float32)
    t_feat = jax.random.normal(k_t, (B, ST, D), jnp.float32)
    params = init_params(k_p)
    w_pack, b_pack = pack_params(params)   # one-time packing, outside the hot path

    out = base_encoder_forward(v_feat, t_feat, w_pack, b_pack)
    jax.block_until_ready(out)
    assert out.shape == (B, S, D)
    print("KERNEL_OK")
</pallas_src>

<mosaic_0001>
module attributes {stable_mosaic.version = 11 : i64} {
  func.func @_encoder_kernel(%arg0: memref<2x8x32xf32, #tpu.memory_space<vmem>>, %arg1: memref<2x8x32xf32, #tpu.memory_space<vmem>>, %arg2: memref<4x32x128xbf16, #tpu.memory_space<vmem>>, %arg3: memref<4x128xf32, #tpu.memory_space<vmem>>, %arg4: memref<32x32xf32, #tpu.memory_space<vmem>>) attributes {dimension_semantics = [], scalar_prefetch = 0 : i64, scratch_operands = 0 : i64, tpu.core_type = #tpu.core_type<tc>} {
    %c0 = arith.constant 0 : index
    %c0_0 = arith.constant 0 : index
    %c0_1 = arith.constant 0 : index
    %0 = vector.load %arg0[%c0, %c0_0, %c0_1] : memref<2x8x32xf32, #tpu.memory_space<vmem>>, vector<1x8x32xf32>
    %1 = vector.shape_cast %0 : vector<1x8x32xf32> to vector<8x32xf32>
    %c0_2 = arith.constant 0 : index
    %c0_3 = arith.constant 0 : index
    %c0_4 = arith.constant 0 : index
    %2 = vector.load %arg1[%c0_2, %c0_3, %c0_4] : memref<2x8x32xf32, #tpu.memory_space<vmem>>, vector<1x8x32xf32>
    %3 = vector.shape_cast %2 : vector<1x8x32xf32> to vector<8x32xf32>
    %c1 = arith.constant 1 : index
    %c0_5 = arith.constant 0 : index
    %c0_6 = arith.constant 0 : index
    %4 = vector.load %arg0[%c1, %c0_5, %c0_6] : memref<2x8x32xf32, #tpu.memory_space<vmem>>, vector<1x8x32xf32>
    %5 = vector.shape_cast %4 : vector<1x8x32xf32> to vector<8x32xf32>
    %c1_7 = arith.constant 1 : index
    %c0_8 = arith.constant 0 : index
    %c0_9 = arith.constant 0 : index
    %6 = vector.load %arg1[%c1_7, %c0_8, %c0_9] : memref<2x8x32xf32, #tpu.memory_space<vmem>>, vector<1x8x32xf32>
    %7 = vector.shape_cast %6 : vector<1x8x32xf32> to vector<8x32xf32>
    %8 = tpu.concatenate %1, %3, %5, %7 in 0 : vector<8x32xf32>, vector<8x32xf32>, vector<8x32xf32>, vector<8x32xf32> -> vector<32x32xf32>
    %c0_10 = arith.constant 0 : index
    %c0_11 = arith.constant 0 : index
    %9 = vector.load %arg3[%c0_10, %c0_11] : memref<4x128xf32, #tpu.memory_space<vmem>>, vector<4x128xf32>
    %10 = vector.extract_strided_slice %9 {offsets = [0, 0], sizes = [1, 64], strides = [1, 1]} : vector<4x128xf32> to vector<1x64xf32>
    %11 = vector.extract_strided_slice %9 {offsets = [1, 0], sizes = [1, 128], strides = [1, 1]} : vector<4x128xf32> to vector<1x128xf32>
    %12 = vector.extract_strided_slice %9 {offsets = [2, 0], sizes = [1, 32], strides = [1, 1]} : vector<4x128xf32> to vector<1x32xf32>
    %13 = vector.extract_strided_slice %9 {offsets = [2, 32], sizes = [1, 32], strides = [1, 1]} : vector<4x128xf32> to vector<1x32xf32>
    %14 = vector.extract_strided_slice %9 {offsets = [2, 64], sizes = [1, 32], strides = [1, 1]} : vector<4x128xf32> to vector<1x32xf32>
    %15 = vector.extract_strided_slice %9 {offsets = [3, 0], sizes = [1, 32], strides = [1, 1]} : vector<4x128xf32> to vector<1x32xf32>
    %cst = arith.constant dense<0.000000e+00> : vector<32xf32>
    %16 = vector.multi_reduction <add>, %8, %cst [1] : vector<32x32xf32> to vector<32xf32>
    %17 = vector.shape_cast %16 : vector<32xf32> to vector<32x1xf32>
    %cst_12 = arith.constant 3.200000e+01 : f32
    %18 = vector.broadcast %cst_12 : f32 to vector<32x1xf32>
    %19 = arith.divf %17, %18 : vector<32x1xf32>
    %20 = vector.broadcast %19 : vector<32x1xf32> to vector<32x32xf32>
    %21 = arith.subf %8, %20 : vector<32x32xf32>
    %22 = arith.mulf %21, %21 : vector<32x32xf32>
    %cst_13 = arith.constant dense<0.000000e+00> : vector<32xf32>
    %23 = vector.multi_reduction <add>, %22, %cst_13 [1] : vector<32x32xf32> to vector<32xf32>
    %24 = vector.shape_cast %23 : vector<32xf32> to vector<32x1xf32>
    %cst_14 = arith.constant 3.200000e+01 : f32
    %25 = vector.broadcast %cst_14 : f32 to vector<32x1xf32>
    %26 = arith.divf %24, %25 : vector<32x1xf32>
    %27 = vector.broadcast %19 : vector<32x1xf32> to vector<32x32xf32>
    %28 = arith.subf %8, %27 : vector<32x32xf32>
    %cst_15 = arith.constant 9.99999974E-6 : f32
    %29 = vector.broadcast %cst_15 : f32 to vector<32x1xf32>
    %30 = arith.addf %26, %29 : vector<32x1xf32>
    %31 = math.rsqrt %30 : vector<32x1xf32>
    %32 = vector.broadcast %31 : vector<32x1xf32> to vector<32x32xf32>
    %33 = arith.mulf %28, %32 : vector<32x32xf32>
    %34 = vector.broadcast %12 : vector<1x32xf32> to vector<32x32xf32>
    %35 = arith.mulf %33, %34 : vector<32x32xf32>
    %36 = vector.broadcast %13 : vector<1x32xf32> to vector<32x32xf32>
    %37 = arith.addf %35, %36 : vector<32x32xf32>
    %38 = arith.truncf %37 : vector<32x32xf32> to vector<32x32xbf16>
    %c0_16 = arith.constant 0 : index
    %c0_17 = arith.constant 0 : index
    %c0_18 = arith.constant 0 : index
    %39 = vector.load %arg2[%c0_16, %c0_17, %c0_18] : memref<4x32x128xbf16, #tpu.memory_space<vmem>>, vector<1x32x128xbf16>
    %40 = vector.shape_cast %39 : vector<1x32x128xbf16> to vector<32x128xbf16>
    %cst_19 = arith.constant dense<0.000000e+00> : vector<32x128xf32>
    %41 = tpu.matmul %38, %40, %cst_19 {dimension_numbers = #tpu.dot_dimension_numbers<[1], [0], [0], [1], [0, 0, 1, 1], [], []>} : vector<32x32xbf16>, vector<32x128xbf16>, vector<32x128xf32> -> vector<32x128xf32>
    %c1_20 = arith.constant 1 : index
    %c0_21 = arith.constant 0 : index
    %c0_22 = arith.constant 0 : index
    %42 = vector.load %arg2[%c1_20, %c0_21, %c0_22] : memref<4x32x128xbf16, #tpu.memory_space<vmem>>, vector<1x32x128xbf16>
    %43 = vector.shape_cast %42 : vector<1x32x128xbf16> to vector<32x128xbf16>
    %cst_23 = arith.constant dense<0.000000e+00> : vector<32x128xf32>
    %44 = tpu.matmul %38, %43, %cst_23 {dimension_numbers = #tpu.dot_dimension_numbers<[1], [0], [0], [1], [0, 0, 1, 1], [], []>} : vector<32x32xbf16>, vector<32x128xbf16>, vector<32x128xf32> -> vector<32x128xf32>
    %45 = vector.extract_strided_slice %41 {offsets = [0, 0], sizes = [32, 64], strides = [1, 1]} : vector<32x128xf32> to vector<32x64xf32>
    %46 = vector.broadcast %10 : vector<1x64xf32> to vector<32x64xf32>
    %47 = arith.addf %45, %46 : vector<32x64xf32>
    %48 = vector.extract_strided_slice %47 {offsets = [0, 0], sizes = [32, 32], strides = [1, 1]} : vector<32x64xf32> to vector<32x32xf32>
    %49 = vector.extract_strided_slice %47 {offsets = [0, 32], sizes = [32, 32], strides = [1, 1]} : vector<32x64xf32> to vector<32x32xf32>
    %50 = tpu.iota {dimensions = array<i32: 1>} : vector<1x32xi32>
    %c0_i32 = arith.constant 0 : i32
    %51 = vector.broadcast %c0_i32 : i32 to vector<1x32xi32>
    %52 = arith.cmpi sge, %50, %51 : vector<1x32xi32>
    %c8_i32 = arith.constant 8 : i32
    %53 = vector.broadcast %c8_i32 : i32 to vector<1x32xi32>
    %54 = arith.cmpi slt, %50, %53 : vector<1x32xi32>
    %55 = arith.andi %52, %54 : vector<1x32xi1>
    %56 = arith.extui %55 : vector<1x32xi1> to vector<1x32xi32>
    %57 = arith.sitofp %56 : vector<1x32xi32> to vector<1x32xf32>
    %c8_i32_24 = arith.constant 8 : i32
    %58 = vector.broadcast %c8_i32_24 : i32 to vector<1x32xi32>
    %59 = arith.cmpi sge, %50, %58 : vector<1x32xi32>
    %c16_i32 = arith.constant 16 : i32
    %60 = vector.broadcast %c16_i32 : i32 to vector<1x32xi32>
    %61 = arith.cmpi slt, %50, %60 : vector<1x32xi32>
    %62 = arith.andi %59, %61 : vector<1x32xi1>
    %63 = arith.extui %62 : vector<1x32xi1> to vector<1x32xi32>
    %64 = arith.sitofp %63 : vector<1x32xi32> to vector<1x32xf32>
    %c16_i32_25 = arith.constant 16 : i32
    %65 = vector.broadcast %c16_i32_25 : i32 to vector<1x32xi32>
    %66 = arith.cmpi sge, %50, %65 : vector<1x32xi32>
    %c24_i32 = arith.constant 24 : i32
    %67 = vector.broadcast %c24_i32 : i32 to vector<1x32xi32>
    %68 = arith.cmpi slt, %50, %67 : vector<1x32xi32>
    %69 = arith.andi %66, %68 : vector<1x32xi1>
    %70 = arith.extui %69 : vector<1x32xi1> to vector<1x32xi32>
    %71 = arith.sitofp %70 : vector<1x32xi32> to vector<1x32xf32>
    %c24_i32_26 = arith.constant 24 : i32
    %72 = vector.broadcast %c24_i32_26 : i32 to vector<1x32xi32>
    %73 = arith.cmpi sge, %50, %72 : vector<1x32xi32>
    %c32_i32 = arith.constant 32 : i32
    %74 = vector.broadcast %c32_i32 : i32 to vector<1x32xi32>
    %75 = arith.cmpi slt, %50, %74 : vector<1x32xi32>
    %76 = arith.andi %73, %75 : vector<1x32xi1>
    %77 = arith.extui %76 : vector<1x32xi1> to vector<1x32xi32>
    %78 = arith.sitofp %77 : vector<1x32xi32> to vector<1x32xf32>
    %79 = vector.extract_strided_slice %48 {offsets = [0, 0], sizes = [16, 32], strides = [1, 1]} : vector<32x32xf32> to vector<16x32xf32>
    %80 = vector.extract_strided_slice %49 {offsets = [0, 0], sizes = [16, 32], strides = [1, 1]} : vector<32x32xf32> to vector<16x32xf32>
    %81 = vector.broadcast %57 : vector<1x32xf32> to vector<16x32xf32>
    %82 = arith.mulf %80, %81 : vector<16x32xf32>
    %83 = vector.broadcast %64 : vector<1x32xf32> to vector<16x32xf32>
    %84 = arith.mulf %80, %83 : vector<16x32xf32>
    %85 = vector.broadcast %71 : vector<1x32xf32> to vector<16x32xf32>
    %86 = arith.mulf %80, %85 : vector<16x32xf32>
    %87 = vector.broadcast %78 : vector<1x32xf32> to vector<16x32xf32>
    %88 = arith.mulf %80, %87 : vector<16x32xf32>
    %89 = tpu.concatenate %82, %84, %86, %88 in 0 : vector<16x32xf32>, vector<16x32xf32>, vector<16x32xf32>, vector<16x32xf32> -> vector<64x32xf32>
    %90 = arith.truncf %79 : vector<16x32xf32> to vector<16x32xbf16>
    %91 = arith.truncf %89 : vector<64x32xf32> to vector<64x32xbf16>
    %cst_27 = arith.constant dense<0.000000e+00> : vector<16x64xf32>
    %92 = tpu.matmul %90, %91, %cst_27 {dimension_numbers = #tpu.dot_dimension_numbers<[1], [1], [0], [0], [0, 0, 1, 0], [], []>} : vector<16x32xbf16>, vector<64x32xbf16>, vector<16x64xf32> -> vector<16x64xf32>
    %cst_28 = arith.constant 0.353553385 : f32
    %93 = vector.broadcast %cst_28 : f32 to vector<16x64xf32>
    %94 = arith.mulf %92, %93 : vector<16x64xf32>
    %95 = vector.extract_strided_slice %94 {offsets = [0, 0], sizes = [16, 16], strides = [1, 1]} : vector<16x64xf32> to vector<16x16xf32>
    %cst_29 = arith.constant dense<0xFF800000> : vector<16xf32>
    %96 = vector.multi_reduction <maximumf>, %95, %cst_29 [1] : vector<16x16xf32> to vector<16xf32>
    %97 = vector.shape_cast %96 : vector<16xf32> to vector<16x1xf32>
    %98 = vector.broadcast %97 : vector<16x1xf32> to vector<16x16xf32>
    %99 = arith.subf %95, %98 : vector<16x16xf32>
    %100 = math.exp %99 : vector<16x16xf32>
    %cst_30 = arith.constant dense<0.000000e+00> : vector<16xf32>
    %101 = vector.multi_reduction <add>, %100, %cst_30 [1] : vector<16x16xf32> to vector<16xf32>
    %102 = vector.shape_cast %101 : vector<16xf32> to vector<16x1xf32>
    %103 = vector.broadcast %102 : vector<16x1xf32> to vector<16x16xf32>
    %104 = arith.divf %100, %103 : vector<16x16xf32>
    %105 = vector.extract_strided_slice %94 {offsets = [0, 16], sizes = [16, 16], strides = [1, 1]} : vector<16x64xf32> to vector<16x16xf32>
    %cst_31 = arith.constant dense<0xFF800000> : vector<16xf32>
    %106 = vector.multi_reduction <maximumf>, %105, %cst_31 [1] : vector<16x16xf32> to vector<16xf32>
    %107 = vector.shape_cast %106 : vector<16xf32> to vector<16x1xf32>
    %108 = vector.broadcast %107 : vector<16x1xf32> to vector<16x16xf32>
    %109 = arith.subf %105, %108 : vector<16x16xf32>
    %110 = math.exp %109 : vector<16x16xf32>
    %cst_32 = arith.constant dense<0.000000e+00> : vector<16xf32>
    %111 = vector.multi_reduction <add>, %110, %cst_32 [1] : vector<16x16xf32> to vector<16xf32>
    %112 = vector.shape_cast %111 : vector<16xf32> to vector<16x1xf32>
    %113 = vector.broadcast %112 : vector<16x1xf32> to vector<16x16xf32>
    %114 = arith.divf %110, %113 : vector<16x16xf32>
    %115 = vector.extract_strided_slice %94 {offsets = [0, 32], sizes = [16, 16], strides = [1, 1]} : vector<16x64xf32> to vector<16x16xf32>
    %cst_33 = arith.constant dense<0xFF800000> : vector<16xf32>
    %116 = vector.multi_reduction <maximumf>, %115, %cst_33 [1] : vector<16x16xf32> to vector<16xf32>
    %117 = vector.shape_cast %116 : vector<16xf32> to vector<16x1xf32>
    %118 = vector.broadcast %117 : vector<16x1xf32> to vector<16x16xf32>
    %119 = arith.subf %115, %118 : vector<16x16xf32>
    %120 = math.exp %119 : vector<16x16xf32>
    %cst_34 = arith.constant dense<0.000000e+00> : vector<16xf32>
    %121 = vector.multi_reduction <add>, %120, %cst_34 [1] : vector<16x16xf32> to vector<16xf32>
    %122 = vector.shape_cast %121 : vector<16xf32> to vector<16x1xf32>
    %123 = vector.broadcast %122 : vector<16x1xf32> to vector<16x16xf32>
    %124 = arith.divf %120, %123 : vector<16x16xf32>
    %125 = vector.extract_strided_slice %94 {offsets = [0, 48], sizes = [16, 16], strides = [1, 1]} : vector<16x64xf32> to vector<16x16xf32>
    %cst_35 = arith.constant dense<0xFF800000> : vector<16xf32>
    %126 = vector.multi_reduction <maximumf>, %125, %cst_35 [1] : vector<16x16xf32> to vector<16xf32>
    %127 = vector.shape_cast %126 : vector<16xf32> to vector<16x1xf32>
    %128 = vector.broadcast %127 : vector<16x1xf32> to vector<16x16xf32>
    %129 = arith.subf %125, %128 : vector<16x16xf32>
    %130 = math.exp %129 : vector<16x16xf32>
    %cst_36 = arith.constant dense<0.000000e+00> : vector<16xf32>
    %131 = vector.multi_reduction <add>, %130, %cst_36 [1] : vector<16x16xf32> to vector<16xf32>
    %132 = vector.shape_cast %131 : vector<16xf32> to vector<16x1xf32>
    %133 = vector.broadcast %132 : vector<16x1xf32> to vector<16x16xf32>
    %134 = arith.divf %130, %133 : vector<16x16xf32>
    %135 = tpu.concatenate %104, %114, %124, %134 in 1 : vector<16x16xf32>, vector<16x16xf32>, vector<16x16xf32>, vector<16x16xf32> -> vector<16x64xf32>
    %136 = arith.truncf %135 : vector<16x64xf32> to vector<16x64xbf16>
    %137 = vector.extract_strided_slice %44 {offsets = [0, 0], sizes = [16, 128], strides = [1, 1]} : vector<32x128xf32> to vector<16x128xf32>
    %138 = vector.extract_strided_slice %137 {offsets = [0, 0], sizes = [16, 32], strides = [1, 1]} : vector<16x128xf32> to vector<16x32xf32>
    %139 = vector.extract_strided_slice %137 {offsets = [0, 32], sizes = [16, 32], strides = [1, 1]} : vector<16x128xf32> to vector<16x32xf32>
    %140 = vector.extract_strided_slice %137 {offsets = [0, 64], sizes = [16, 32], strides = [1, 1]} : vector<16x128xf32> to vector<16x32xf32>
    %141 = vector.extract_strided_slice %137 {offsets = [0, 96], sizes = [16, 32], strides = [1, 1]} : vector<16x128xf32> to vector<16x32xf32>
    %142 = tpu.concatenate %138, %139, %140, %141 in 0 : vector<16x32xf32>, vector<16x32xf32>, vector<16x32xf32>, vector<16x32xf32> -> vector<64x32xf32>
    %143 = arith.truncf %142 : vector<64x32xf32> to vector<64x32xbf16>
    %cst_37 = arith.constant dense<0.000000e+00> : vector<16x32xf32>
    %144 = tpu.matmul %136, %143, %cst_37 {dimension_numbers = #tpu.dot_dimension_numbers<[1], [0], [0], [1], [0, 0, 1, 1], [], []>} : vector<16x64xbf16>, vector<64x32xbf16>, vector<16x32xf32> -> vector<16x32xf32>
    %145 = vector.extract_strided_slice %48 {offsets = [16, 0], sizes = [16, 32], strides = [1, 1]} : vector<32x32xf32> to vector<16x32xf32>
    %146 = vector.extract_strided_slice %49 {offsets = [16, 0], sizes = [16, 32], strides = [1, 1]} : vector<32x32xf32> to vector<16x32xf32>
    %147 = vector.broadcast %57 : vector<1x32xf32> to vector<16x32xf32>
    %148 = arith.mulf %146, %147 : vector<16x32xf32>
    %149 = vector.broadcast %64 : vector<1x32xf32> to vector<16x32xf32>
    %150 = arith.mulf %146, %149 : vector<16x32xf32>
    %151 = vector.broadcast %71 : vector<1x32xf32> to vector<16x32xf32>
    %152 = arith.mulf %146, %151 : vector<16x32xf32>
    %153 = vector.broadcast %78 : vector<1x32xf32> to vector<16x32xf32>
    %154 = arith.mulf %146, %153 : vector<16x32xf32>
    %155 = tpu.concatenate %148, %150, %152, %154 in 0 : vector<16x32xf32>, vector<16x32xf32>, vector<16x32xf32>, vector<16x32xf32> -> vector<64x32xf32>
    %156 = arith.truncf %145 : vector<16x32xf32> to vector<16x32xbf16>
    %157 = arith.truncf %155 : vector<64x32xf32> to vector<64x32xbf16>
    %cst_38 = arith.constant dense<0.000000e+00> : vector<16x64xf32>
    %158 = tpu.matmul %156, %157, %cst_38 {dimension_numbers = #tpu.dot_dimension_numbers<[1], [1], [0], [0], [0, 0, 1, 0], [], []>} : vector<16x32xbf16>, vector<64x32xbf16>, vector<16x64xf32> -> vector<16x64xf32>
    %cst_39 = arith.constant 0.353553385 : f32
    %159 = vector.broadcast %cst_39 : f32 to vector<16x64xf32>
    %160 = arith.mulf %158, %159 : vector<16x64xf32>
    %161 = vector.extract_strided_slice %160 {offsets = [0, 0], sizes = [16, 16], strides = [1, 1]} : vector<16x64xf32> to vector<16x16xf32>
    %cst_40 = arith.constant dense<0xFF800000> : vector<16xf32>
    %162 = vector.multi_reduction <maximumf>, %161, %cst_40 [1] : vector<16x16xf32> to vector<16xf32>
    %163 = vector.shape_cast %162 : vector<16xf32> to vector<16x1xf32>
    %164 = vector.broadcast %163 : vector<16x1xf32> to vector<16x16xf32>
    %165 = arith.subf %161, %164 : vector<16x16xf32>
    %166 = math.exp %165 : vector<16x16xf32>
    %cst_41 = arith.constant dense<0.000000e+00> : vector<16xf32>
    %167 = vector.multi_reduction <add>, %166, %cst_41 [1] : vector<16x16xf32> to vector<16xf32>
    %168 = vector.shape_cast %167 : vector<16xf32> to vector<16x1xf32>
    %169 = vector.broadcast %168 : vector<16x1xf32> to vector<16x16xf32>
    %170 = arith.divf %166, %169 : vector<16x16xf32>
    %171 = vector.extract_strided_slice %160 {offsets = [0, 16], sizes = [16, 16], strides = [1, 1]} : vector<16x64xf32> to vector<16x16xf32>
    %cst_42 = arith.constant dense<0xFF800000> : vector<16xf32>
    %172 = vector.multi_reduction <maximumf>, %171, %cst_42 [1] : vector<16x16xf32> to vector<16xf32>
    %173 = vector.shape_cast %172 : vector<16xf32> to vector<16x1xf32>
    %174 = vector.broadcast %173 : vector<16x1xf32> to vector<16x16xf32>
    %175 = arith.subf %171, %174 : vector<16x16xf32>
    %176 = math.exp %175 : vector<16x16xf32>
    %cst_43 = arith.constant dense<0.000000e+00> : vector<16xf32>
    %177 = vector.multi_reduction <add>, %176, %cst_43 [1] : vector<16x16xf32> to vector<16xf32>
    %178 = vector.shape_cast %177 : vector<16xf32> to vector<16x1xf32>
    %179 = vector.broadcast %178 : vector<16x1xf32> to vector<16x16xf32>
    %180 = arith.divf %176, %179 : vector<16x16xf32>
    %181 = vector.extract_strided_slice %160 {offsets = [0, 32], sizes = [16, 16], strides = [1, 1]} : vector<16x64xf32> to vector<16x16xf32>
    %cst_44 = arith.constant dense<0xFF800000> : vector<16xf32>
    %182 = vector.multi_reduction <maximumf>, %181, %cst_44 [1] : vector<16x16xf32> to vector<16xf32>
    %183 = vector.shape_cast %182 : vector<16xf32> to vector<16x1xf32>
    %184 = vector.broadcast %183 : vector<16x1xf32> to vector<16x16xf32>
    %185 = arith.subf %181, %184 : vector<16x16xf32>
    %186 = math.exp %185 : vector<16x16xf32>
    %cst_45 = arith.constant dense<0.000000e+00> : vector<16xf32>
    %187 = vector.multi_reduction <add>, %186, %cst_45 [1] : vector<16x16xf32> to vector<16xf32>
    %188 = vector.shape_cast %187 : vector<16xf32> to vector<16x1xf32>
    %189 = vector.broadcast %188 : vector<16x1xf32> to vector<16x16xf32>
    %190 = arith.divf %186, %189 : vector<16x16xf32>
    %191 = vector.extract_strided_slice %160 {offsets = [0, 48], sizes = [16, 16], strides = [1, 1]} : vector<16x64xf32> to vector<16x16xf32>
    %cst_46 = arith.constant dense<0xFF800000> : vector<16xf32>
    %192 = vector.multi_reduction <maximumf>, %191, %cst_46 [1] : vector<16x16xf32> to vector<16xf32>
    %193 = vector.shape_cast %192 : vector<16xf32> to vector<16x1xf32>
    %194 = vector.broadcast %193 : vector<16x1xf32> to vector<16x16xf32>
    %195 = arith.subf %191, %194 : vector<16x16xf32>
    %196 = math.exp %195 : vector<16x16xf32>
    %cst_47 = arith.constant dense<0.000000e+00> : vector<16xf32>
    %197 = vector.multi_reduction <add>, %196, %cst_47 [1] : vector<16x16xf32> to vector<16xf32>
    %198 = vector.shape_cast %197 : vector<16xf32> to vector<16x1xf32>
    %199 = vector.broadcast %198 : vector<16x1xf32> to vector<16x16xf32>
    %200 = arith.divf %196, %199 : vector<16x16xf32>
    %201 = tpu.concatenate %170, %180, %190, %200 in 1 : vector<16x16xf32>, vector<16x16xf32>, vector<16x16xf32>, vector<16x16xf32> -> vector<16x64xf32>
    %202 = arith.truncf %201 : vector<16x64xf32> to vector<16x64xbf16>
    %203 = vector.extract_strided_slice %44 {offsets = [16, 0], sizes = [16, 128], strides = [1, 1]} : vector<32x128xf32> to vector<16x128xf32>
    %204 = vector.extract_strided_slice %203 {offsets = [0, 0], sizes = [16, 32], strides = [1, 1]} : vector<16x128xf32> to vector<16x32xf32>
    %205 = vector.extract_strided_slice %203 {offsets = [0, 32], sizes = [16, 32], strides = [1, 1]} : vector<16x128xf32> to vector<16x32xf32>
    %206 = vector.extract_strided_slice %203 {offsets = [0, 64], sizes = [16, 32], strides = [1, 1]} : vector<16x128xf32> to vector<16x32xf32>
    %207 = vector.extract_strided_slice %203 {offsets = [0, 96], sizes = [16, 32], strides = [1, 1]} : vector<16x128xf32> to vector<16x32xf32>
    %208 = tpu.concatenate %204, %205, %206, %207 in 0 : vector<16x32xf32>, vector<16x32xf32>, vector<16x32xf32>, vector<16x32xf32> -> vector<64x32xf32>
    %209 = arith.truncf %208 : vector<64x32xf32> to vector<64x32xbf16>
    %cst_48 = arith.constant dense<0.000000e+00> : vector<16x32xf32>
    %210 = tpu.matmul %202, %209, %cst_48 {dimension_numbers = #tpu.dot_dimension_numbers<[1], [0], [0], [1], [0, 0, 1, 1], [], []>} : vector<16x64xbf16>, vector<64x32xbf16>, vector<16x32xf32> -> vector<16x32xf32>
    %211 = tpu.concatenate %144, %210 in 0 : vector<16x32xf32>, vector<16x32xf32> -> vector<32x32xf32>
    %212 = vector.broadcast %14 : vector<1x32xf32> to vector<32x32xf32>
    %213 = arith.addf %211, %212 : vector<32x32xf32>
    %214 = arith.addf %8, %213 : vector<32x32xf32>
    %215 = arith.truncf %214 : vector<32x32xf32> to vector<32x32xbf16>
    %c2 = arith.constant 2 : index
    %c0_49 = arith.constant 0 : index
    %c0_50 = arith.constant 0 : index
    %216 = vector.load %arg2[%c2, %c0_49, %c0_50] : memref<4x32x128xbf16, #tpu.memory_space<vmem>>, vector<1x32x128xbf16>
    %217 = vector.shape_cast %216 : vector<1x32x128xbf16> to vector<32x128xbf16>
    %cst_51 = arith.constant dense<0.000000e+00> : vector<32x128xf32>
    %218 = tpu.matmul %215, %217, %cst_51 {dimension_numbers = #tpu.dot_dimension_numbers<[1], [0], [0], [1], [0, 0, 1, 1], [], []>} : vector<32x32xbf16>, vector<32x128xbf16>, vector<32x128xf32> -> vector<32x128xf32>
    %219 = vector.broadcast %11 : vector<1x128xf32> to vector<32x128xf32>
    %220 = arith.addf %218, %219 : vector<32x128xf32>
    %cst_52 = arith.constant 5.000000e-01 : f32
    %221 = vector.broadcast %cst_52 : f32 to vector<32x128xf32>
    %222 = arith.mulf %220, %221 : vector<32x128xf32>
    %cst_53 = arith.constant 0.707106769 : f32
    %223 = vector.broadcast %cst_53 : f32 to vector<32x128xf32>
    %224 = arith.mulf %220, %223 : vector<32x128xf32>
    %225 = math.erf %224 : vector<32x128xf32>
    %cst_54 = arith.constant 1.000000e+00 : f32
    %226 = vector.broadcast %cst_54 : f32 to vector<32x128xf32>
    %227 = arith.addf %226, %225 : vector<32x128xf32>
    %228 = arith.mulf %222, %227 : vector<32x128xf32>
    %229 = arith.truncf %228 : vector<32x128xf32> to vector<32x128xbf16>
    %c3 = arith.constant 3 : index
    %c0_55 = arith.constant 0 : index
    %c0_56 = arith.constant 0 : index
    %230 = vector.load %arg2[%c3, %c0_55, %c0_56] : memref<4x32x128xbf16, #tpu.memory_space<vmem>>, vector<1x32x128xbf16>
    %231 = vector.shape_cast %230 : vector<1x32x128xbf16> to vector<32x128xbf16>
    %cst_57 = arith.constant dense<0.000000e+00> : vector<32x32xf32>
    %232 = tpu.matmul %229, %231, %cst_57 {dimension_numbers = #tpu.dot_dimension_numbers<[1], [1], [0], [0], [0, 0, 1, 0], [], []>} : vector<32x128xbf16>, vector<32x128xbf16>, vector<32x32xf32> -> vector<32x32xf32>
    %233 = vector.broadcast %15 : vector<1x32xf32> to vector<32x32xf32>
    %234 = arith.addf %232, %233 : vector<32x32xf32>
    %c0_58 = arith.constant 0 : index
    %c0_59 = arith.constant 0 : index
    %235 = vector.load %arg4[%c0_58, %c0_59] : memref<32x32xf32, #tpu.memory_space<vmem>>, vector<32x32xf32>
    tpu.vector_store %arg4[%c0_58, %c0_59], %234 {strides = array<i32>} : memref<32x32xf32, #tpu.memory_space<vmem>>, vector<32x32xf32>,
    return
  }
}

</mosaic_0001>

<bundles_post_ra>
// kernel: tpu_custom_call.1
= control target key start
LH: loop header
LB: loop body
LE: loop exit
PB: predicated region body
PF: predicated region fallthrough
CT: control target
= control target key end

     0   :  { %9 = vsyncpa [#allocation3], 0  ;;  %s1877_s0 = inlined_call_operand.hbm [shape: f32[2,8,32], index: 0, kind: input, shape index: {}]   ;;  %s1878_s1 = inlined_call_operand.hbm [shape: f32[2,8,32], index: 1, kind: input, shape index: {}]   ;;  %s1879_s2 = inlined_call_operand.hbm [shape: bf16[4,32,128], index: 2, kind: input, shape index: {}]   ;;  %s1880_s3 = inlined_call_operand.vmem [shape: f32[4,128], index: 3, kind: input, shape index: {}]   ;;  %s1881_s4 = inlined_call_operand.hbm [shape: f32[32,32], index: 4, kind: output, shape index: {}]  }
   0x1   :  { %10 = vsyncpa [#allocation6], 0 }
   0x2   :  { %11 = vsyncpa [#allocation4], 0  ;;  %s1440_s15 = smov [#allocation5]   ;;  %s1441_s17 = smov [#allocation2]  }
   0x3   :  { %s29_s16 = sshll.u32 %s1440_s15, 4  ;;  %s17_s18 = sshll.u32 %s1441_s17, 4  ;;  %s30_s16 = int_to_ptr.vmem [resolvable:$true] %s29_s16  ;;  %s1479_s18 = int_to_ptr.vmem [resolvable:$true] %s17_s18 }
   0x4   :  { %s1346_s21 = scalar_lea.hbm %s1878_s1, 256 }
   0x5   :  { %p1347_p0 = scmp.ne.s32.totalorder %s1878_s1, %s1346_s21  ;;  %p1350_p1 = scmp.lt.u32.totalorder %s1346_s21, %s1878_s1 }
   0x7   :  { %p1352_p2 = pnand %p1350_p1, %p1347_p0 }
   0x9   :  { %1355 = shalt.err (!%p1352_p2)
}
   0xa   :  { %s1356_s26 = scalar_lea.vmem %s30_s16, 256  ;;  %p1361_p4 = scmp.lt.s32.totalorder %s30_s16, %s30_s16 }
   0xb   :  { %p1357_p3 = scmp.ne.s32.totalorder %s30_s16, %s1356_s26  ;;  %p1362_p5 = scmp.lt.s32.totalorder %s1356_s26, %s1356_s26 }
   0xd   :  { %p1363_p6 = por %p1362_p5, %p1361_p4 }
   0xf   :  { %p1364_p7 = pnand %p1363_p6, %p1357_p3 }
  0x11   :  { %1367 = shalt.err (!%p1364_p7)
}
  0x12   :  { %s1442_s27 = smov 128   ;;  %s1443_s28 = smov 8  }
  0x13   :  { %35 = dma.hbm_to_vmem [thread:$0]  %s1878_s1, 256, %s30_s16, [#allocation6], %s1442_s27, %s1442_s27, %s1443_s28  }
  0x14   :  { %s1368_s7 = scalar_lea.hbm %s1877_s0, 256 }
  0x15   :  { %p1369_p8 = scmp.ne.s32.totalorder %s1877_s0, %s1368_s7  ;;  %p1372_p9 = scmp.lt.u32.totalorder %s1368_s7, %s1877_s0 }
  0x17   :  { %p1374_p10 = pnand %p1372_p9, %p1369_p8 }
  0x19   :  { %1377 = shalt.err (!%p1374_p10)
}
  0x1a   :  { %s1378_s12 = scalar_lea.vmem %s1479_s18, 256  ;;  %p1383_p12 = scmp.lt.s32.totalorder %s1479_s18, %s1479_s18 }
  0x1b   :  { %p1379_p11 = scmp.ne.s32.totalorder %s1479_s18, %s1378_s12  ;;  %p1384_p13 = scmp.lt.s32.totalorder %s1378_s12, %s1378_s12 }
  0x1d   :  { %p1385_p0 = por %p1384_p13, %p1383_p12 }
  0x1f   :  { %p1386_p1 = pnand %p1385_p0, %p1379_p11 }
  0x21   :  { %1389 = shalt.err (!%p1386_p1)
}
  0x22   :  { %23 = dma.hbm_to_vmem [thread:$0]  %s1877_s0, 256, %s1479_s18, [#allocation3], %s1442_s27, %s1442_s27, %s1443_s28  }
  0x23   :  { %s1444_s14 = smov [#allocation7]   ;;  %s1390_s19 = scalar_lea.hbm %s1879_s2, 1024 }
  0x24   :  { %s41_s15 = sshll.u32 %s1444_s14, 4  ;;  %p1391_p2 = scmp.ne.s32.totalorder %s1879_s2, %s1390_s19  ;;  %s42_s15 = int_to_ptr.vmem [resolvable:$true] %s41_s15 }
  0x25   :  { %p1394_p3 = scmp.lt.u32.totalorder %s1390_s19, %s1879_s2 }
  0x27   :  { %p1396_p4 = pnand %p1394_p3, %p1391_p2 }
  0x29   :  { %1399 = shalt.err (!%p1396_p4)
}
  0x2a   :  { %s1400_s24 = scalar_lea.vmem %s42_s15, 1024  ;;  %p1405_p6 = scmp.lt.s32.totalorder %s42_s15, %s42_s15 }
  0x2b   :  { %p1401_p5 = scmp.ne.s32.totalorder %s42_s15, %s1400_s24  ;;  %p1406_p7 = scmp.lt.s32.totalorder %s1400_s24, %s1400_s24 }
  0x2d   :  { %p1407_p8 = por %p1406_p7, %p1405_p6 }
  0x2f   :  { %p1408_p9 = pnand %p1407_p8, %p1401_p5 }
  0x31   :  { %1411 = shalt.err (!%p1408_p9)
}
  0x32   :  { %s1445_s0 = smov 64   ;;  %s1446_s18 = smov 4  }
  0x33   :  { %47 = dma.hbm_to_vmem [thread:$0]  %s1879_s2, 1024, %s42_s15, [#allocation6], %s1445_s0, %s1445_s0, %s1446_s18  }
  0x34   :  { %1434 = dma.done.wait [#allocation3], 256  }
  0x35   :  { %1435 = vsyncadd [#allocation3], 4294967040 }
  0x36   :  { %1436 = dma.done.wait [#allocation6], 1280  }
  0x37   :  { %1437 = vsyncadd [#allocation6], 4294966016  ;;  %vm67_vm0 = vcmask 261120   ;;  %v60_v0 = vld [vmem:[#allocation2] sm:$0xff]  ;;  %v63_v1 = vld [vmem:[#allocation2 + $0x8] sm:$0xff]  ;;  %v121_v28 = vlaneseq  ;;  %s1447_s30 = smov 96  }
  0x38   :  { %v61_v2 = vld [vmem:[#allocation5] sm:$0xff]  ;;  %v68_v3 = vsel %vm67_vm0, %v60_v0, 0.0  ;;  %v74_v4 = vsel %vm67_vm0, %v63_v1, 0.0  ;;  %v65_v5 = vld [vmem:[#allocation5 + $0x8] sm:$0xff]  ;;  %v1560_v31 = vld [vmem:[%s1880_s3] sm:$0xf] }
  0x39   :  { %69 = vadd.xlane.f32.xlu0 %v68_v3  ;;  %75 = vadd.xlane.f32.xlu1 %v74_v4  ;;  %v71_v6 = vsel %vm67_vm0, %v61_v2, 0.0  ;;  %v77_v7 = vsel %vm67_vm0, %v65_v5, 0.0  ;;  %v1554_v29 = vshrl.u32 %v121_v28, 7  ;;  %v1253_v33 = vld [vmem:[#allocation7] sm:$0xff]   ;;  %v1254_v34 = vld [vmem:[#allocation7 + $0x10] sm:$0xff]   ;;  %v1255_v35 = vld [vmem:[#allocation7 + $0x8] sm:$0xff]  }
  0x3a   :  { %1129 = vmatprep.subr.bf16.mxu0 %v1253_v33  ;;  %1137 = vmatprep.subr.bf16.mxu1 %v1254_v34  ;;  %v1256_v36 = vld [vmem:[#allocation7 + $0x18] sm:$0xff]   ;;  %v285_v37 = vand.u32 127, %v121_v28  ;;  %v1448_v38 = vmov 0.0   ;;  %s1449_s5 = smov 32   ;;  %vm1450_vm11 = vmmov 0   ;;  %vm459_vm12 = vcmask 392448  }
  0x3b   :  { %v123_v30 = vsub.s32 2, %v1554_v29  ;;  %1130 = vmatpush3.bf16.msra.mxu0 %v1253_v33  ;;  %1138 = vmatpush3.bf16.msra.mxu1 %v1254_v34  ;;  %vm428_vm13 = vcmask 261248   ;;  %vm490_vm14 = vcmask 523648   ;;  %vm405_vm15 = vcmask 130048   ;;  %s1451_s6 = smov 112   ;;  %s1452_s7 = smov 80  }
  0x3c   :  { %1131 = vmatprep.subr.bf16.mxu0 %v1255_v35  ;;  %1139 = vmatprep.subr.bf16.mxu1 %v1256_v36  ;;  %vm287_vm1 = vcmp.lt.s32.totalorder %v285_v37, 8  ;;  %vm291_vm2 = vcmp.ge.s32.totalorder %v285_v37, 8  ;;  %vm292_vm3 = vcmp.lt.s32.totalorder %v285_v37, 16  ;;  %vm301_vm4 = vcmp.ge.s32.totalorder %v285_v37, 24 }
  0x3d   :  { %72 = vadd.xlane.f32.xlu0 %v71_v6  ;;  %78 = vadd.xlane.f32.xlu1 %v77_v7  ;;  %v1563_v32 = vrot.slane %v1560_v31, %v123_v30  ;;  %v1079_v39 = vsel %vm287_vm1, 1.0, %v1448_v38  ;;  %vm293_vm5 = vmand %vm291_vm2, %vm292_vm3  ;;  %vm302_vm6 = vcmp.lt.s32.totalorder %v285_v37, 32  ;;  %vm296_vm7 = vcmp.ge.s32.totalorder %v285_v37, 16 }
  0x3e   :  { %vm297_vm8 = vcmp.lt.s32.totalorder %v285_v37, 24  ;;  %vm303_vm9 = vmand %vm301_vm4, %vm302_vm6  ;;  %v1080_v40 = vsel %vm293_vm5, 1.0, %v1448_v38  ;;  %vm525_vm1 = vcmask 392192   ;;  %vm553_vm2 = vcmask 523264  }
  0x3f   :  { %1132 = vmatpush3.bf16.msra.mxu0 %v1255_v35  ;;  %1140 = vmatpush3.bf16.msra.mxu1 %v1256_v36  ;;  %v1082_v41 = vsel %vm303_vm9, 1.0, %v1448_v38  ;;  %vm298_vm10 = vmand %vm296_vm7, %vm297_vm8 }
  0x40   :  { %1157 = vmatprep.subr.bf16.mxu1 %v1448_v38  ;;  %1145 = vmatprep.subr.bf16.mxu0 %v1448_v38  ;;  %v1081_v42 = vsel %vm298_vm10, 1.0, %v1448_v38 }
  0xc6   :  { %v70_v8 = vpop.xlane.xlu0 %69  ;;  %v76_v9 = vpop.xlane.xlu1 %75 }
  0xc7   :  { %v81_v10 = vmul.f32 0.03125, %v70_v8  ;;  %v83_v11 = vmul.f32 0.03125, %v76_v9 }
  0xc9   :  { %v1534_v12 = vsub.f32 %v60_v0, %v81_v10  ;;  %v1536_v13 = vsub.f32 %v63_v1, %v83_v11 }
  0xca   :  { %v73_v14 = vpop.xlane.xlu0 %72  ;;  %v79_v15 = vpop.xlane.xlu1 %78 }
  0xcb   :  { %v82_v16 = vmul.f32 0.03125, %v73_v14  ;;  %v84_v17 = vmul.f32 0.03125, %v79_v15  ;;  %v89_v18 = vmul.f32 %v1534_v12, %v1534_v12  ;;  %v91_v19 = vmul.f32 %v1536_v13, %v1536_v13 }
  0xcd   :  { %v1542_v20 = vsub.f32 %v61_v2, %v82_v16  ;;  %v1544_v21 = vsub.f32 %v65_v5, %v84_v17  ;;  %v93_v22 = vsel %vm67_vm0, %v89_v18, 0.0  ;;  %v99_v23 = vsel %vm67_vm0, %v91_v19, 0.0 }
  0xce   :  { %94 = vadd.xlane.f32.xlu0 %v93_v22 }
  0xcf   :  { %v90_v24 = vmul.f32 %v1542_v20, %v1542_v20  ;;  %v92_v25 = vmul.f32 %v1544_v21, %v1544_v21 }
  0xd1   :  { %v96_v26 = vsel %vm67_vm0, %v90_v24, 0.0  ;;  %v102_v27 = vsel %vm67_vm0, %v92_v25, 0.0 }
  0xd2   :  { %100 = vadd.xlane.f32.xlu0 %v99_v23  ;;  %97 = vadd.xlane.f32.xlu1 %v96_v26 }
  0xd6   :  { %103 = vadd.xlane.f32.xlu1 %v102_v27 }
  0xe7   :  { %307 = vrot.lane.b32.xlu1 %v1079_v39, %s1449_s5 }
  0xe8   :  { %130 = vrot.lane.b32.xlu0 %v1563_v32, %s1447_s30 }
  0xeb   :  { %313 = vrot.lane.b32.xlu1 %v1080_v40, %s1449_s5 }
  0xec   :  { %325 = vrot.lane.b32.xlu0 %v1082_v41, %s1449_s5 }
  0xef   :  { %319 = vrot.lane.b32.xlu1 %v1081_v42, %s1449_s5 }
 0x15b   :  { %v95_v43 = vpop.xlane.xlu0 %94 }
 0x15c   :  { %v105_v44 = vmul.f32 0.03125, %v95_v43 }
 0x15e   :  { %v109_v45 = vadd.f32 1e-05, %v105_v44 }
 0x15f   :  { %v98_v46 = vpop.xlane.xlu1 %97  ;;  %v101_v47 = vpop.xlane.xlu0 %100 }
 0x160   :  { %1261 = vrsqrt.f32 %v109_v45  ;;  %v106_v48 = vmul.f32 0.03125, %v98_v46  ;;  %v107_v49 = vmul.f32 0.03125, %v101_v47 }
 0x162   :  { %v110_v50 = vadd.f32 1e-05, %v106_v48  ;;  %v111_v51 = vadd.f32 1e-05, %v107_v49 }
 0x163   :  { %v104_v52 = vpop.xlane.xlu1 %103  ;;  %v131_v62 = vpop.permute.xlu0 %130 }
 0x164   :  { %1263 = vrsqrt.f32 %v110_v50  ;;  %v108_v53 = vmul.f32 0.03125, %v104_v52 }
 0x165   :  { %1265 = vrsqrt.f32 %v111_v51 }
 0x166   :  { %v112_v54 = vadd.f32 1e-05, %v108_v53 }
 0x167   :  { %v308_v10 = vpop.permute.xlu1 %307  ;;  %v326_v15 = vpop.permute.xlu0 %325 }
 0x168   :  { %1267 = vrsqrt.f32 %v112_v54 }
 0x16a   :  { %v1262_v55 = vpop.eup %1261 }
 0x16b   :  { %v117_v56 = vmul.f32 %v1262_v55, %v1534_v12  ;;  %v314_v11 = vpop.permute.xlu1 %313  ;;  %v278_v12 = vsub.s32 0, %v1554_v29 }
 0x16d   :  { %v125_v60 = vmul.f32 %v1563_v32, %v117_v56 }
 0x16e   :  { %v1264_v57 = vpop.eup %1263 }
 0x16f   :  { %v1266_v58 = vpop.eup %1265  ;;  %v118_v59 = vmul.f32 %v1264_v57, %v1542_v20  ;;  %v133_v3 = vadd.f32 %v131_v62, %v125_v60  ;;  %v320_v14 = vpop.permute.xlu1 %319 }
 0x170   :  { %v119_v61 = vmul.f32 %v1266_v58, %v1536_v13  ;;  %v279_v13 = vrot.slane %v1560_v31, %v278_v12 }
 0x171   :  { %v126_v63 = vmul.f32 %v1563_v32, %v118_v59 }
 0x172   :  { %v1268_v0 = vpop.eup %1267  ;;  %v127_v2 = vmul.f32 %v1563_v32, %v119_v61 }
 0x173   :  { %v120_v1 = vmul.f32 %v1268_v0, %v1544_v21  ;;  %v134_v4 = vadd.f32 %v131_v62, %v126_v63 }
 0x174   :  { %v135_v7 = vadd.f32 %v131_v62, %v127_v2 }
 0x175   :  { %v128_v5 = vmul.f32 %v1563_v32, %v120_v1  ;;  %v137_v6 = vpack.c.bf16 %v134_v4, %v133_v3 }
 0x177   :  { %v136_v8 = vadd.f32 %v131_v62, %v128_v5  ;;  %1133 = vmatprep.mubr.msk.bf16.mxu0 %vm67_vm0, %v137_v6  ;;  %1141 = vmatprep.mubr.msk.bf16.mxu1 %vm67_vm0, %v137_v6 }
 0x179   :  { %v138_v9 = vpack.c.bf16 %v136_v8, %v135_v7 }
 0x17b   :  { %1134 = vmatmul.mubr.msk.bf16.vlgmr.msra.gmra.mrb[0].mxu0 %vm67_vm0, %v138_v9  ;;  %1142 = vmatmul.mubr.msk.bf16.vlgmr.msra.gmra.mrb[0].mxu1 %vm67_vm0, %v138_v9 }
 0x17c   :  { %1153 = vmatprep.mubr.msk.bf16.mxu0 %vm1450_vm11, %v1448_v38  ;;  %1165 = vmatprep.mubr.msk.bf16.mxu1 %vm1450_vm11, %v1448_v38 }
 0x24e   :  { %v1135_v16 = vpop.f32.mrb[0].mxu0  ;;  %v1591_v17 = vpop.f32.mrb[0].mxu1 }
 0x24f   :  { %v1593_v18 = vadd.f32 %v1135_v16, %v279_v13  ;;  %v195_v19 = vpop.f32.mrb[1].mxu0  ;;  %v261_v20 = vpop.f32.mrb[1].mxu1 }
 0x250   :  { %v1595_v21 = vadd.f32 %v279_v13, %v195_v19  ;;  %v1136_v22 = vpop.f32.mrb[2].mxu0  ;;  %v1144_v23 = vpop.f32.mrb[2].mxu1 }
 0x251   :  { %v1598_v24 = vmul.f32 %v320_v14, %v1593_v18  ;;  %v1600_v25 = vadd.f32 %v1136_v22, %v279_v13  ;;  %v820_v26 = vpack.c.bf16 %v1144_v23, %v1591_v17  ;;  %v1604_v27 = vmul.f32 %v326_v15, %v1593_v18  ;;  %v198_v28 = vpop.f32.mrb[3].mxu0  ;;  %v264_v30 = vpop.f32.mrb[3].mxu1 }
 0x252   :  { %v322_v31 = vmul.f32 %v320_v14, %v1595_v21  ;;  %v328_v33 = vmul.f32 %v326_v15, %v1595_v21  ;;  %v281_v34 = vadd.f32 %v279_v13, %v198_v28  ;;  %v549_v35 = vpack.c.bf16 %v264_v30, %v261_v20 }
 0x253   :  { %v1609_v36 = vmul.f32 %v326_v15, %v1600_v25  ;;  %v316_v37 = vmul.f32 %v314_v11, %v1595_v21  ;;  %v310_v39 = vmul.f32 %v308_v10, %v1595_v21  ;;  %v1613_v40 = vpack.i.bf16 %v264_v30, %v261_v20 }
 0x254   :  { %1158 = vmatpush3.bf16.msra.mxu1 %v549_v35  ;;  %v317_v41 = vmul.f32 %v314_v11, %v281_v34  ;;  %v311_v42 = vmul.f32 %v308_v10, %v281_v34  ;;  %v323_v43 = vmul.f32 %v320_v14, %v281_v34  ;;  %v329_v44 = vmul.f32 %v326_v15, %v281_v34 }
 0x255   :  { %v330_v45 = vpack.c.bf16 %v281_v34, %v1595_v21  ;;  %v1617_v46 = vmul.f32 %v308_v10, %v1593_v18  ;;  %v1620_v47 = vmul.f32 %v308_v10, %v1600_v25  ;;  %1159 = vmatprep.subr.bf16.mxu1 %v1448_v38  ;;  %v1626_v53 = vmul.f32 %v314_v11, %v1593_v18 }
 0x256   :  { %v332_v48 = vpack.c.bf16 %v317_v41, %v316_v37  ;;  %v331_v49 = vpack.c.bf16 %v311_v42, %v310_v39  ;;  %v333_v50 = vpack.c.bf16 %v323_v43, %v322_v31  ;;  %v334_v51 = vpack.c.bf16 %v329_v44, %v328_v33 }
 0x257   :  { %v607_v52 = vpack.c.bf16 %v1620_v47, %v1617_v46  ;;  %v1629_v54 = vmul.f32 %v314_v11, %v1600_v25  ;;  %v610_v55 = vpack.c.bf16 %v1609_v36, %v1604_v27  ;;  %v1636_v56 = vmul.f32 %v320_v14, %v1600_v25 }
 0x258   :  { %341 = vrot.lane.b32.xlu0 %v332_v48, %s1447_s30  ;;  %339 = vrot.lane.b32.xlu1 %v331_v49, %s1447_s30  ;;  %v606_v57 = vpack.c.bf16 %v1600_v25, %v1593_v18  ;;  %v1643_v59 = vpack.i.bf16 %v1144_v23, %v1591_v17 }
 0x259   :  { %v608_v58 = vpack.c.bf16 %v1629_v54, %v1626_v53  ;;  %v609_v60 = vpack.c.bf16 %v1636_v56, %v1598_v24 }
 0x25c   :  { %343 = vrot.lane.b32.xlu1 %v333_v50, %s1447_s30  ;;  %345 = vrot.lane.b32.xlu0 %v334_v51, %s1447_s30 }
 0x2ca   :  { %v340_v61 = vpop.permute.xlu1 %339  ;;  %v342_v63 = vpop.permute.xlu0 %341 }
 0x2cb   :  { %v351_v62 = vsel %vm67_vm0, %v340_v61, 0  ;;  %v354_v0 = vsel %vm67_vm0, %v342_v63, 0 }
 0x2cc   :  { %1146 = vmatpush3.bf16.xpose.msra.mxu0 %v351_v62 }
 0x2cd   :  { %1147 = vmatprep.subr.bf16.mxu0 %v1448_v38 }
 0x2ce   :  { %v344_v1 = vpop.permute.xlu1 %343  ;;  %v346_v3 = vpop.permute.xlu0 %345 }
 0x2cf   :  { %v357_v2 = vsel %vm67_vm0, %v344_v1, 0  ;;  %v360_v4 = vsel %vm67_vm0, %v346_v3, 0 }
 0x2d4   :  { %1148 = vmatpush3.bf16.xpose.msra.mxu0 %v354_v0 }
 0x2d5   :  { %1149 = vmatprep.subr.bf16.mxu0 %v1448_v38 }
 0x2dc   :  { %1150 = vmatpush3.bf16.xpose.msra.mxu0 %v357_v2 }
 0x2dd   :  { %1151 = vmatprep.subr.bf16.mxu0 %v1448_v38 }
 0x2e4   :  { %1152 = vmatpush3.bf16.xpose.msra.mxu0 %v360_v4 }
 0x2e5   :  { %1181 = vmatprep.subr.bf16.mxu0 %v1448_v38 }
 0x2eb   :  { %1154 = vmatmul.mubr.msk.bf16.vlgmr.msra.gmra.mrb[4].mxu0 %vm67_vm0, %v330_v45 }
 0x2ec   :  { %1182 = vmatpush3.bf16.msra.mxu0 %v820_v26  ;;  %1189 = vmatprep.mubr.msk.bf16.mxu0 %vm1450_vm11, %v1448_v38 }
 0x2ed   :  { %1183 = vmatprep.subr.bf16.mxu0 %v1448_v38 }
 0x3be   :  { %v396_v5 = vpop.f32.mrb[4].mxu0 }
 0x3bf   :  { %v1665_v6 = vmul.f32 0.35355338, %v396_v5  ;;  %v1155_v7 = vpop.f32.mrb[5].mxu0 }
 0x3c0   :  { %v399_v8 = vpop.f32.mrb[6].mxu0 }
 0x3c1   :  { %v404_v9 = vmul.f32 0.35355338, %v399_v8  ;;  %v1156_v10 = vpop.f32.mrb[7].mxu0  ;;  %v460_v11 = vsel %vm459_vm12, %v1665_v6, -inf  ;;  %v429_v12 = vsel %vm428_vm13, %v1665_v6, -inf  ;;  %v491_v13 = vsel %vm490_vm14, %v1665_v6, -inf }
 0x3c2   :  { %461 = vmax.xlane.f32.xlu0 %v460_v11  ;;  %430 = vmax.xlane.f32.xlu1 %v429_v12  ;;  %v406_v15 = vsel %vm405_vm15, %v1665_v6, -inf }
 0x3c3   :  { %v432_v14 = vsel %vm428_vm13, %v404_v9, -inf  ;;  %v463_v16 = vsel %vm459_vm12, %v404_v9, -inf  ;;  %v494_v17 = vsel %vm490_vm14, %v404_v9, -inf  ;;  %v409_v19 = vsel %vm405_vm15, %v404_v9, -inf }
 0x3c6   :  { %492 = vmax.xlane.f32.xlu1 %v491_v13  ;;  %433 = vmax.xlane.f32.xlu0 %v432_v14 }
 0x3ca   :  { %407 = vmax.xlane.f32.xlu1 %v406_v15  ;;  %464 = vmax.xlane.f32.xlu0 %v463_v16 }
 0x3ce   :  { %495 = vmax.xlane.f32.xlu0 %v494_v17 }
 0x3d2   :  { %410 = vmax.xlane.f32.xlu0 %v409_v19 }
 0x44f   :  { %v462_v20 = vpop.xlane.xlu0 %461  ;;  %v431_v21 = vpop.xlane.xlu1 %430 }
 0x450   :  { %v466_v22 = vsub.f32 %v1665_v6, %v462_v20  ;;  %v435_v23 = vsub.f32 %v1665_v6, %v431_v21 }
 0x452   :  { %v437_v26 = vmul.f32 1.442695, %v435_v23  ;;  %v468_v31 = vmul.f32 1.442695, %v466_v22 }
 0x453   :  { %v493_v28 = vpop.xlane.xlu1 %492  ;;  %v434_v30 = vpop.xlane.xlu0 %433 }
 0x454   :  { %v436_v33 = vsub.f32 %v404_v9, %v434_v30  ;;  %1269 = vpow2.f32 %v437_v26  ;;  %v497_v34 = vsub.f32 %v1665_v6, %v493_v28 }
 0x455   :  { %1271 = vpow2.f32 %v468_v31 }
 0x456   :  { %v439_v35 = vmul.f32 1.442695, %v436_v33  ;;  %v499_v39 = vmul.f32 1.442695, %v497_v34 }
 0x457   :  { %v465_v37 = vpop.xlane.xlu0 %464  ;;  %v408_v1 = vpop.xlane.xlu1 %407 }
 0x458   :  { %1273 = vpow2.f32 %v439_v35  ;;  %v467_v41 = vsub.f32 %v404_v9, %v465_v37  ;;  %v412_v3 = vsub.f32 %v1665_v6, %v408_v1 }
 0x459   :  { %1275 = vpow2.f32 %v499_v39 }
 0x45a   :  { %v470_v44 = vmul.f32 1.442695, %v467_v41  ;;  %v414_v4 = vmul.f32 1.442695, %v412_v3 }
 0x45b   :  { %v496_v42 = vpop.xlane.xlu0 %495 }
 0x45c   :  { %v498_v43 = vsub.f32 %v404_v9, %v496_v42 }
 0x45e   :  { %v501_v45 = vmul.f32 1.442695, %v498_v43  ;;  %v1682_v48 = vpop.eup %1269 }
 0x45f   :  { %443 = vrot.lane.b32.xlu1 %v1682_v48, %s1451_s6  ;;  %v1686_v49 = vpop.eup %1271  ;;  %v411_v63 = vpop.xlane.xlu0 %410 }
 0x460   :  { %1277 = vpow2.f32 %v501_v45  ;;  %v413_v0 = vsub.f32 %v404_v9, %v411_v63 }
 0x461   :  { %1279 = vpow2.f32 %v470_v44 }
 0x462   :  { %v1688_v50 = vpop.eup %1273  ;;  %v416_v2 = vmul.f32 1.442695, %v413_v0 }
 0x463   :  { %474 = vrot.lane.b32.xlu1 %v1686_v49, %s1447_s30  ;;  %445 = vrot.lane.b32.xlu0 %v1688_v50, %s1451_s6  ;;  %v1694_v51 = vpop.eup %1275 }
 0x464   :  { %1281 = vpow2.f32 %v416_v2 }
 0x465   :  { %1283 = vpow2.f32 %v414_v4 }
 0x467   :  { %505 = vrot.lane.b32.xlu1 %v1694_v51, %s1452_s7 }
 0x46a   :  { %v1698_v61 = vpop.eup %1277 }
 0x46b   :  { %v1700_v62 = vpop.eup %1279  ;;  %507 = vrot.lane.b32.xlu0 %v1698_v61, %s1452_s7 }
 0x46c   :  { %476 = vrot.lane.b32.xlu1 %v1700_v62, %s1447_s30 }
 0x46e   :  { %v1707_v5 = vpop.eup %1281 }
 0x46f   :  { %v421_v7 = vsel %vm405_vm15, %v1707_v5, 0.0  ;;  %v1711_v8 = vpop.eup %1283 }
 0x470   :  { %v418_v10 = vsel %vm405_vm15, %v1711_v8, 0.0 }
 0x48a   :  { %422 = vadd.xlane.f32.xlu0 %v421_v7 }
 0x490   :  { %419 = vadd.xlane.f32.xlu1 %v418_v10 }
 0x4a1   :  { %1224 = vrot.lane.b32.xlu1 %v1613_v40, %s1447_s30 }
 0x4d1   :  { %v444_v9 = vpop.permute.xlu1 %443 }
 0x4d2   :  { %v449_v6 = vsel %vm405_vm15, %v444_v9, 0.0 }
 0x4d3   :  { %450 = vadd.xlane.f32.xlu0 %v449_v6 }
 0x4d5   :  { %v475_v11 = vpop.permute.xlu1 %474  ;;  %v446_v12 = vpop.permute.xlu0 %445 }
 0x4d6   :  { %v480_v13 = vsel %vm405_vm15, %v475_v11, 0.0  ;;  %v452_v14 = vsel %vm405_vm15, %v446_v12, 0.0 }
 0x4d7   :  { %481 = vadd.xlane.f32.xlu1 %v480_v13  ;;  %453 = vadd.xlane.f32.xlu0 %v452_v14 }
 0x4d9   :  { %v506_v15 = vpop.permute.xlu1 %505 }
 0x4da   :  { %v511_v16 = vsel %vm405_vm15, %v506_v15, 0.0 }
 0x4db   :  { %512 = vadd.xlane.f32.xlu1 %v511_v16 }
 0x4dd   :  { %v508_v20 = vpop.permute.xlu0 %507 }
 0x4de   :  { %v477_v17 = vpop.permute.xlu1 %476  ;;  %v514_v21 = vsel %vm405_vm15, %v508_v20, 0.0 }
 0x4df   :  { %v483_v19 = vsel %vm405_vm15, %v477_v17, 0.0 }
 0x4e0   :  { %484 = vadd.xlane.f32.xlu0 %v483_v19 }
 0x4e4   :  { %515 = vadd.xlane.f32.xlu0 %v514_v21 }
 0x4ec   :  { %1234 = vrot.lane.b32.xlu1 %v1613_v40, %s1449_s5 }
 0x4f0   :  { %615 = vrot.lane.b32.xlu1 %v607_v52, %s1447_s30 }
 0x4f4   :  { %617 = vrot.lane.b32.xlu1 %v608_v58, %s1447_s30 }
 0x4f8   :  { %621 = vrot.lane.b32.xlu1 %v610_v55, %s1447_s30 }
 0x4fa   :  { %1229 = vrot.lane.b32.xlu0 %v1613_v40, %s1445_s0 }
 0x4fe   :  { %619 = vrot.lane.b32.xlu0 %v609_v60, %s1447_s30 }
 0x517   :  { %v423_v53 = vpop.xlane.xlu0 %422 }
 0x518   :  { %1285 = vrcp.f32 %v423_v53 }
 0x51d   :  { %v420_v46 = vpop.xlane.xlu1 %419 }
 0x51e   :  { %1287 = vrcp.f32 %v420_v46 }
 0x521   :  { %v1225_v47 = vpop.permute.xlu1 %1224 }
 0x522   :  { %v1227_v52 = vunpack.i.h.bf16 %v1225_v47  ;;  %v1226_v22 = vunpack.i.l.bf16 %v1225_v47  ;;  %v1286_v56 = vpop.eup %1285 }
 0x523   :  { %v427_v0 = vmul.f32 %v1286_v56, %v1707_v5 }
 0x524   :  { %v550_v23 = vpack.c.bf16 %v1227_v52, %v1226_v22 }
 0x526   :  { %1160 = vmatpush3.bf16.msra.mxu1 %v550_v23 }
 0x527   :  { %1161 = vmatprep.subr.bf16.mxu1 %v1448_v38 }
 0x528   :  { %v1288_v58 = vpop.eup %1287 }
 0x529   :  { %v425_v1 = vmul.f32 %v1288_v58, %v1711_v8 }
 0x560   :  { %v451_v54 = vpop.xlane.xlu0 %450 }
 0x561   :  { %1289 = vrcp.f32 %v451_v54 }
 0x564   :  { %v482_v27 = vpop.xlane.xlu1 %481  ;;  %v454_v36 = vpop.xlane.xlu0 %453 }
 0x565   :  { %1291 = vrcp.f32 %v482_v27 }
 0x566   :  { %1293 = vrcp.f32 %v454_v36 }
 0x568   :  { %v513_v40 = vpop.xlane.xlu1 %512 }
 0x569   :  { %1295 = vrcp.f32 %v513_v40 }
 0x56b   :  { %v1290_v60 = vpop.eup %1289 }
 0x56c   :  { %v1235_v28 = vpop.permute.xlu1 %1234  ;;  %v456_v43 = vmul.f32 %v1290_v60, %v1682_v48 }
 0x56d   :  { %v485_v24 = vpop.xlane.xlu0 %484  ;;  %v1237_v39 = vunpack.i.h.bf16 %v1235_v28  ;;  %v1236_v41 = vunpack.i.l.bf16 %v1235_v28 }
 0x56e   :  { %1297 = vrcp.f32 %v485_v24  ;;  %v521_v48 = vsel %vm405_vm15, %v425_v1, %v456_v43 }
 0x56f   :  { %v1292_v26 = vpop.eup %1291  ;;  %v552_v4 = vpack.c.bf16 %v1237_v39, %v1236_v41 }
 0x570   :  { %v1294_v31 = vpop.eup %1293  ;;  %v487_v45 = vmul.f32 %v1292_v26, %v1686_v49  ;;  %v616_v10 = vpop.permute.xlu1 %615 }
 0x571   :  { %v516_v55 = vpop.xlane.xlu0 %515  ;;  %v458_v44 = vmul.f32 %v1294_v31, %v1688_v50 }
 0x572   :  { %1299 = vrcp.f32 %v516_v55 }
 0x573   :  { %v1296_v35 = vpop.eup %1295  ;;  %v522_v50 = vsel %vm405_vm15, %v427_v0, %v458_v44 }
 0x574   :  { %v518_v2 = vmul.f32 %v1296_v35, %v1694_v51  ;;  %v618_v9 = vpop.permute.xlu1 %617 }
 0x575   :  { %v1230_v30 = vpop.permute.xlu0 %1229  ;;  %v630_v6 = vsel %vm67_vm0, %v618_v9, 0 }
 0x576   :  { %v1232_v33 = vunpack.i.h.bf16 %v1230_v30  ;;  %v1231_v34 = vunpack.i.l.bf16 %v1230_v30 }
 0x578   :  { %v1298_v37 = vpop.eup %1297  ;;  %v551_v42 = vpack.c.bf16 %v1232_v33, %v1231_v34  ;;  %v622_v13 = vpop.permute.xlu1 %621 }
 0x579   :  { %v489_v63 = vmul.f32 %v1298_v37, %v1700_v62  ;;  %v523_v62 = vsel %vm67_vm0, %v521_v48, %v487_v45  ;;  %v620_v11 = vpop.permute.xlu0 %619  ;;  %v636_v14 = vsel %vm67_vm0, %v622_v13, 0 }
 0x57a   :  { %1162 = vmatpush3.bf16.msra.mxu1 %v551_v42  ;;  %v526_v7 = vsel %vm525_vm1, %v523_v62, %v518_v2  ;;  %v633_v12 = vsel %vm67_vm0, %v620_v11, 0 }
 0x57b   :  { %1163 = vmatprep.subr.bf16.mxu1 %v1448_v38  ;;  %v524_v5 = vsel %vm67_vm0, %v522_v50, %v489_v63 }
 0x57c   :  { %v1300_v3 = vpop.eup %1299 }
 0x57d   :  { %v520_v49 = vmul.f32 %v1300_v3, %v1698_v61  ;;  %v627_v61 = vsel %vm67_vm0, %v616_v10, 0 }
 0x57e   :  { %1164 = vmatpush3.bf16.msra.mxu1 %v552_v4 }
 0x57f   :  { %v527_v51 = vsel %vm525_vm1, %v524_v5, %v520_v49  ;;  %1169 = vmatprep.subr.bf16.mxu1 %v1448_v38 }
 0x580   :  { %v528_v8 = vpack.c.bf16 %v527_v51, %v526_v7 }
 0x582   :  { %1166 = vmatmul.mubr.msk.bf16.vlgmr.msra.gmra.mrb[4].mxu1 %vm553_vm2, %v528_v8 }
 0x583   :  { %1177 = vmatprep.mubr.msk.bf16.mxu1 %vm1450_vm11, %v1448_v38 }
 0x587   :  { %1170 = vmatpush3.bf16.xpose.msra.mxu1 %v627_v61 }
 0x588   :  { %1171 = vmatprep.subr.bf16.mxu1 %v1448_v38 }
 0x58f   :  { %1172 = vmatpush3.bf16.xpose.msra.mxu1 %v630_v6 }
 0x590   :  { %1173 = vmatprep.subr.bf16.mxu1 %v1448_v38 }
 0x597   :  { %1174 = vmatpush3.bf16.xpose.msra.mxu1 %v633_v12 }
 0x598   :  { %1175 = vmatprep.subr.bf16.mxu1 %v1448_v38 }
 0x59f   :  { %1176 = vmatpush3.bf16.xpose.msra.mxu1 %v636_v14 }
 0x5a6   :  { %1178 = vmatmul.mubr.msk.bf16.vlgmr.msra.gmra.mrb[8].mxu1 %vm67_vm0, %v606_v57 }
 0x655   :  { %v1774_v15 = vpop.f32.mrb[4].mxu1 }
 0x656   :  { %v1167_v16 = vpop.f32.mrb[5].mxu1 }
 0x657   :  { %v1776_v17 = vpop.f32.mrb[6].mxu1 }
 0x658   :  { %v1168_v19 = vpop.f32.mrb[7].mxu1 }
 0x679   :  { %v672_v20 = vpop.f32.mrb[8].mxu1 }
 0x67a   :  { %v679_v21 = vmul.f32 0.35355338, %v672_v20  ;;  %v1179_v46 = vpop.f32.mrb[9].mxu1 }
 0x67b   :  { %v675_v47 = vpop.f32.mrb[10].mxu1 }
 0x67c   :  { %v680_v52 = vmul.f32 0.35355338, %v675_v47  ;;  %v1180_v22 = vpop.f32.mrb[11].mxu1  ;;  %v703_v23 = vsel %vm428_vm13, %v679_v21, -inf  ;;  %v733_v18 = vsel %vm459_vm12, %v679_v21, -inf  ;;  %v763_v27 = vsel %vm490_vm14, %v679_v21, -inf }
 0x67d   :  { %704 = vmax.xlane.f32.xlu0 %v703_v23  ;;  %v681_v36 = vsel %vm405_vm15, %v679_v21, -inf }
 0x67e   :  { %v706_v53 = vsel %vm428_vm13, %v680_v52, -inf  ;;  %v766_v25 = vsel %vm490_vm14, %v680_v52, -inf  ;;  %v736_v57 = vsel %vm459_vm12, %v680_v52, -inf  ;;  %v684_v54 = vsel %vm405_vm15, %v680_v52, -inf }
 0x67f   :  { %707 = vmax.xlane.f32.xlu1 %v706_v53 }
 0x681   :  { %734 = vmax.xlane.f32.xlu0 %v733_v18 }
 0x683   :  { %767 = vmax.xlane.f32.xlu1 %v766_v25 }
 0x685   :  { %737 = vmax.xlane.f32.xlu0 %v736_v57 }
 0x687   :  { %685 = vmax.xlane.f32.xlu1 %v684_v54 }
 0x689   :  { %764 = vmax.xlane.f32.xlu0 %v763_v27 }
 0x68d   :  { %682 = vmax.xlane.f32.xlu0 %v681_v36 }
 0x70a   :  { %v705_v40 = vpop.xlane.xlu0 %704 }
 0x70b   :  { %v709_v24 = vsub.f32 %v679_v21, %v705_v40 }
 0x70c   :  { %v708_v55 = vpop.xlane.xlu1 %707 }
 0x70d   :  { %v711_v56 = vmul.f32 1.442695, %v709_v24  ;;  %v710_v60 = vsub.f32 %v680_v52, %v708_v55 }
 0x70e   :  { %v735_v58 = vpop.xlane.xlu0 %734 }
 0x70f   :  { %1301 = vpow2.f32 %v711_v56  ;;  %v739_v26 = vsub.f32 %v679_v21, %v735_v58  ;;  %v713_v31 = vmul.f32 1.442695, %v710_v60 }
 0x710   :  { %v768_v34 = vpop.xlane.xlu1 %767 }
 0x711   :  { %v741_v28 = vmul.f32 1.442695, %v739_v26  ;;  %v770_v39 = vsub.f32 %v680_v52, %v768_v34 }
 0x712   :  { %v738_v30 = vpop.xlane.xlu0 %737 }
 0x713   :  { %1303 = vpow2.f32 %v741_v28  ;;  %v740_v33 = vsub.f32 %v680_v52, %v738_v30  ;;  %v773_v44 = vmul.f32 1.442695, %v770_v39 }
 0x714   :  { %1305 = vpow2.f32 %v713_v31  ;;  %v686_v50 = vpop.xlane.xlu1 %685 }
 0x715   :  { %v743_v35 = vmul.f32 1.442695, %v740_v33  ;;  %v688_v49 = vsub.f32 %v680_v52, %v686_v50 }
 0x716   :  { %v765_v37 = vpop.xlane.xlu0 %764 }
 0x717   :  { %v769_v41 = vsub.f32 %v679_v21, %v765_v37  ;;  %1307 = vpow2.f32 %v743_v35  ;;  %v691_v62 = vmul.f32 1.442695, %v688_v49 }
 0x719   :  { %v1786_v42 = vpop.eup %1301  ;;  %v771_v43 = vmul.f32 1.442695, %v769_v41 }
 0x71a   :  { %717 = vrot.lane.b32.xlu0 %v1786_v42, %s1451_s6  ;;  %v683_v3 = vpop.xlane.xlu0 %682 }
 0x71b   :  { %1309 = vpow2.f32 %v771_v43  ;;  %v687_v4 = vsub.f32 %v679_v21, %v683_v3 }
 0x71c   :  { %1311 = vpow2.f32 %v773_v44  ;;  %v1341_v44 = vld [vmem:[#allocation2] sm:$0xff] }
 0x71d   :  { %v1790_v45 = vpop.eup %1303  ;;  %v689_v48 = vmul.f32 1.442695, %v687_v4  ;;  %v1342_v4 = vld [vmem:[#allocation5] sm:$0xff] }
 0x71e   :  { %747 = vrot.lane.b32.xlu1 %v1790_v45, %s1447_s30  ;;  %v1794_v63 = vpop.eup %1305 }
 0x71f   :  { %1313 = vpow2.f32 %v689_v48 }
 0x720   :  { %1315 = vpow2.f32 %v691_v62 }
 0x721   :  { %v1798_v0 = vpop.eup %1307 }
 0x722   :  { %719 = vrot.lane.b32.xlu1 %v1794_v63, %s1451_s6 }
 0x725   :  { %v1800_v1 = vpop.eup %1309 }
 0x726   :  { %777 = vrot.lane.b32.xlu0 %v1800_v1, %s1452_s7  ;;  %749 = vrot.lane.b32.xlu1 %v1798_v0, %s1447_s30  ;;  %v1806_v2 = vpop.eup %1311 }
 0x729   :  { %v1810_v5 = vpop.eup %1313 }
 0x72a   :  { %779 = vrot.lane.b32.xlu1 %v1806_v2, %s1452_s7  ;;  %v693_v7 = vsel %vm405_vm15, %v1810_v5, 0.0  ;;  %v1814_v51 = vpop.eup %1315 }
 0x72b   :  { %v696_v8 = vsel %vm405_vm15, %v1814_v51, 0.0 }
 0x745   :  { %694 = vadd.xlane.f32.xlu0 %v693_v7 }
 0x74e   :  { %697 = vadd.xlane.f32.xlu1 %v696_v8 }
 0x75f   :  { %1244 = vrot.lane.b32.xlu1 %v1643_v59, %s1445_s0 }
 0x78c   :  { %v718_v10 = vpop.permute.xlu0 %717 }
 0x78d   :  { %v723_v61 = vsel %vm405_vm15, %v718_v10, 0.0 }
 0x78e   :  { %724 = vadd.xlane.f32.xlu0 %v723_v61 }
 0x790   :  { %v748_v9 = vpop.permute.xlu1 %747 }
 0x791   :  { %v753_v6 = vsel %vm405_vm15, %v748_v9, 0.0  ;;  %v1257_v9 = vld [vmem:[#allocation7 + $0x20] sm:$0xff]  }
 0x792   :  { %754 = vadd.xlane.f32.xlu0 %v753_v6 }
 0x794   :  { %v720_v11 = vpop.permute.xlu1 %719 }
 0x795   :  { %v726_v20 = vsel %vm405_vm15, %v720_v11, 0.0 }
 0x798   :  { %v778_v12 = vpop.permute.xlu0 %777  ;;  %v750_v13 = vpop.permute.xlu1 %749 }
 0x799   :  { %v783_v14 = vsel %vm405_vm15, %v778_v12, 0.0  ;;  %v756_v16 = vsel %vm405_vm15, %v750_v13, 0.0 }
 0x79a   :  { %784 = vadd.xlane.f32.xlu0 %v783_v14  ;;  %757 = vadd.xlane.f32.xlu1 %v756_v16  ;;  %v1343_v16 = vld [vmem:[#allocation2 + $0x8] sm:$0xff] }
 0x79c   :  { %v780_v19 = vpop.permute.xlu1 %779 }
 0x79d   :  { %v786_v21 = vsel %vm405_vm15, %v780_v19, 0.0 }
 0x79e   :  { %727 = vadd.xlane.f32.xlu0 %v726_v20  ;;  %787 = vadd.xlane.f32.xlu1 %v786_v21  ;;  %v1344_v20 = vld [vmem:[#allocation5 + $0x8] sm:$0xff] }
 0x7af   :  { %1249 = vrot.lane.b32.xlu1 %v1643_v59, %s1449_s5 }
 0x7b3   :  { %868 = vrot.lane.b32.xlu1 %v1563_v32, %s1445_s0 }
 0x7b4   :  { %1239 = vrot.lane.b32.xlu0 %v1643_v59, %s1447_s30 }
 0x7d2   :  { %v695_v46 = vpop.xlane.xlu0 %694 }
 0x7d3   :  { %1317 = vrcp.f32 %v695_v46 }
 0x7db   :  { %v698_v47 = vpop.xlane.xlu1 %697 }
 0x7dd   :  { %v1318_v59 = vpop.eup %1317 }
 0x7df   :  { %v1245_v22 = vpop.permute.xlu1 %1244 }
 0x7e0   :  { %v1247_v24 = vunpack.i.h.bf16 %v1245_v22  ;;  %v1246_v55 = vunpack.i.l.bf16 %v1245_v22  ;;  %v888_v22 = vsub.s32 1, %v1554_v29 }
 0x7e2   :  { %v822_v34 = vpack.c.bf16 %v1247_v24, %v1246_v55 }
 0x81b   :  { %v725_v52 = vpop.xlane.xlu0 %724 }
 0x81c   :  { %1319 = vrcp.f32 %v725_v52  ;;  %v1260_v52 = vld [vmem:[#allocation7 + $0x38] sm:$0xff]  }
 0x81f   :  { %v755_v23 = vpop.xlane.xlu0 %754 }
 0x820   :  { %1321 = vrcp.f32 %v755_v23  ;;  %v1345_v23 = vld [vmem:[%s1880_s3] sm:$0xf]  ;;  %s1453_s3 = smov [#allocation8]  }
 0x821   :  { %1323 = vrcp.f32 %v698_v47  ;;  %v1259_v47 = vld [vmem:[#allocation7 + $0x30] sm:$0xff]   ;;  %s1058_s10 = sshll.u32 %s1453_s3, 4  ;;  %s1059_s10 = int_to_ptr.vmem [resolvable:$true] %s1058_s10 }
 0x822   :  { %1201 = vmatprep.subr.bf16.mxu1 %v1259_v47  ;;  %s1412_s11 = scalar_lea.vmem %s1059_s10, 512  ;;  %p1417_p11 = scmp.lt.s32.totalorder %s1059_s10, %s1059_s10 }
 0x823   :  { %1202 = vmatpush3.bf16.xpose.msra.mxu1 %v1259_v47  ;;  %p1413_p10 = scmp.ne.s32.totalorder %s1059_s10, %s1412_s11  ;;  %p1418_p12 = scmp.lt.s32.totalorder %s1412_s11, %s1412_s11 }
 0x824   :  { %1203 = vmatprep.subr.bf16.mxu1 %v1260_v52 }
 0x825   :  { %p1419_p13 = por %p1418_p12, %p1417_p11 }
 0x826   :  { %v1320_v40 = vpop.eup %1319 }
 0x827   :  { %v785_v53 = vpop.xlane.xlu0 %784  ;;  %v758_v18 = vpop.xlane.xlu1 %757  ;;  %v730_v35 = vmul.f32 %v1320_v40, %v1786_v42  ;;  %p1420_p0 = pnand %p1419_p13, %p1413_p10 }
 0x828   :  { %1325 = vrcp.f32 %v785_v53  ;;  %v889_v53 = vrot.slane %v1345_v23, %v888_v22 }
 0x829   :  { %1327 = vrcp.f32 %v758_v18 }
 0x82a   :  { %v1322_v56 = vpop.eup %1321 }
 0x82b   :  { %v728_v25 = vpop.xlane.xlu0 %727  ;;  %v788_v57 = vpop.xlane.xlu1 %787  ;;  %v760_v37 = vmul.f32 %v1322_v56, %v1790_v45  ;;  %1204 = vmatpush3.bf16.xpose.msra.mxu1 %v1260_v52 }
 0x82c   :  { %1329 = vrcp.f32 %v728_v25  ;;  %v1324_v60 = vpop.eup %1323 }
 0x82d   :  { %1331 = vrcp.f32 %v788_v57 }
 0x82f   :  { %v1240_v32 = vpop.permute.xlu0 %1239  ;;  %v1250_v54 = vpop.permute.xlu1 %1249 }
 0x830   :  { %v1242_v27 = vunpack.i.h.bf16 %v1240_v32  ;;  %v1241_v36 = vunpack.i.l.bf16 %v1240_v32  ;;  %v1252_v41 = vunpack.i.h.bf16 %v1250_v54  ;;  %v1251_v43 = vunpack.i.l.bf16 %v1250_v54 }
 0x832   :  { %v821_v58 = vpack.c.bf16 %v1242_v27, %v1241_v36  ;;  %v1326_v28 = vpop.eup %1325  ;;  %v823_v61 = vpack.c.bf16 %v1252_v41, %v1251_v43 }
 0x833   :  { %v869_v26 = vpop.permute.xlu1 %868  ;;  %v1328_v33 = vpop.eup %1327  ;;  %v790_v49 = vmul.f32 %v1326_v28, %v1800_v1 }
 0x834   :  { %v871_v30 = vadd.f32 %v869_v26, %v1774_v15  ;;  %v872_v31 = vadd.f32 %v869_v26, %v1776_v17  ;;  %1184 = vmatpush3.bf16.msra.mxu0 %v821_v58  ;;  %v700_v15 = vmul.f32 %v1318_v59, %v1810_v5  ;;  %v702_v17 = vmul.f32 %v1324_v60, %v1814_v51 }
 0x835   :  { %1185 = vmatprep.subr.bf16.mxu0 %v1448_v38  ;;  %v762_v45 = vmul.f32 %v1328_v33, %v1798_v0 }
 0x836   :  { %v1330_v39 = vpop.eup %1329  ;;  %v875_v3 = vadd.f32 %v1341_v44, %v871_v30  ;;  %v876_v48 = vadd.f32 %v1342_v4, %v872_v31  ;;  %v793_v7 = vsel %vm405_vm15, %v700_v15, %v730_v35  ;;  %v986_v15 = vsub.s32 3, %v1554_v29 }
 0x837   :  { %v1332_v50 = vpop.eup %1331  ;;  %v732_v42 = vmul.f32 %v1330_v39, %v1794_v63  ;;  %v795_v5 = vsel %vm67_vm0, %v793_v7, %v760_v37 }
 0x838   :  { %1186 = vmatpush3.bf16.msra.mxu0 %v822_v34  ;;  %v879_v62 = vpack.c.bf16 %v876_v48, %v875_v3  ;;  %v792_v10 = vmul.f32 %v1332_v50, %v1806_v2  ;;  %v797_v1 = vsel %vm525_vm1, %v795_v5, %v790_v49  ;;  %v1258_v2 = vld [vmem:[#allocation7 + $0x28] sm:$0xff]  }
 0x839   :  { %v794_v8 = vsel %vm405_vm15, %v702_v17, %v732_v42  ;;  %1187 = vmatprep.subr.bf16.mxu0 %v1448_v38  ;;  %v987_v17 = vrot.slane %v1345_v23, %v986_v15 }
 0x83a   :  { %v796_v51 = vsel %vm67_vm0, %v794_v8, %v762_v45 }
 0x83b   :  { %v798_v63 = vsel %vm525_vm1, %v796_v51, %v792_v10 }
 0x83c   :  { %1188 = vmatpush3.bf16.msra.mxu0 %v823_v61  ;;  %v799_v0 = vpack.c.bf16 %v798_v63, %v797_v1 }
 0x83d   :  { %1193 = vmatprep.subr.bf16.mxu0 %v1257_v9 }
 0x83f   :  { %1190 = vmatmul.mubr.msk.bf16.vlgmr.msra.gmra.mrb[8].mxu0 %vm553_vm2, %v799_v0 }
 0x840   :  { %1197 = vmatprep.mubr.msk.bf16.mxu0 %vm67_vm0, %v879_v62  ;;  %1194 = vmatpush3.bf16.msra.mxu0 %v1257_v9 }
 0x841   :  { %1195 = vmatprep.subr.bf16.mxu0 %v1258_v2 }
 0x844   :  { %1196 = vmatpush3.bf16.msra.mxu0 %v1258_v2 }
 0x912   :  { %v861_v38 = vpop.f32.mrb[8].mxu0 }
 0x913   :  { %v873_v6 = vadd.f32 %v869_v26, %v861_v38  ;;  %v1191_v11 = vpop.f32.mrb[9].mxu0 }
 0x914   :  { %v864_v12 = vpop.f32.mrb[10].mxu0 }
 0x915   :  { %v874_v13 = vadd.f32 %v869_v26, %v864_v12  ;;  %v1192_v14 = vpop.f32.mrb[11].mxu0  ;;  %v877_v19 = vadd.f32 %v1343_v16, %v873_v6 }
 0x917   :  { %v878_v21 = vadd.f32 %v1344_v20, %v874_v13 }
 0x919   :  { %v880_v46 = vpack.c.bf16 %v878_v21, %v877_v19 }
 0x91b   :  { %1198 = vmatmul.mubr.msk.bf16.vlgmr.msra.gmra.mrb[12].mxu0 %vm67_vm0, %v880_v46 }
 0x9ee   :  { %v1199_v18 = vpop.f32.mrb[12].mxu0 }
 0x9ef   :  { %v951_v25 = vadd.f32 %v1199_v18, %v889_v53  ;;  %v942_v57 = vpop.f32.mrb[13].mxu0 }
 0x9f0   :  { %v943_v32 = vadd.f32 %v942_v57, %v889_v53  ;;  %v1200_v54 = vpop.f32.mrb[14].mxu0 }
 0x9f1   :  { %v963_v59 = vmul.f32 0.70710677, %v951_v25  ;;  %v954_v27 = vadd.f32 %v1200_v54, %v889_v53  ;;  %v945_v36 = vpop.f32.mrb[15].mxu0  ;;  %v959_v33 = vmul.f32 0.5, %v951_v25 }
 0x9f2   :  { %v961_v40 = vmul.f32 0.70710677, %v943_v32  ;;  %v946_v24 = vadd.f32 %v945_v36, %v889_v53  ;;  %v957_v37 = vmul.f32 0.5, %v943_v32 }
 0x9f3   :  { %1333 = verf.f32 %v963_v59  ;;  %v964_v55 = vmul.f32 0.70710677, %v954_v27  ;;  %v960_v34 = vmul.f32 0.5, %v954_v27 }
 0x9f4   :  { %1335 = verf.f32 %v961_v40  ;;  %v962_v56 = vmul.f32 0.70710677, %v946_v24  ;;  %v958_v39 = vmul.f32 0.5, %v946_v24 }
 0x9f5   :  { %1337 = verf.f32 %v964_v55 }
 0x9f6   :  { %1339 = verf.f32 %v962_v56 }
 0x9fd   :  { %v1334_v58 = vpop.eup %1333 }
 0x9fe   :  { %v1336_v60 = vpop.eup %1335  ;;  %v971_v26 = vadd.f32 1.0, %v1334_v58 }
 0x9ff   :  { %v1338_v28 = vpop.eup %1337  ;;  %v969_v30 = vadd.f32 1.0, %v1336_v60 }
 0xa00   :  { %v1340_v31 = vpop.eup %1339  ;;  %v972_v35 = vadd.f32 1.0, %v1338_v28  ;;  %v975_v43 = vmul.f32 %v971_v26, %v959_v33 }
 0xa01   :  { %v970_v41 = vadd.f32 1.0, %v1340_v31  ;;  %v973_v3 = vmul.f32 %v969_v30, %v957_v37 }
 0xa02   :  { %v976_v44 = vmul.f32 %v972_v35, %v960_v34 }
 0xa03   :  { %v974_v4 = vmul.f32 %v970_v41, %v958_v39 }
 0xa04   :  { %v978_v48 = vpack.c.bf16 %v976_v44, %v975_v43 }
 0xa05   :  { %v977_v50 = vpack.c.bf16 %v974_v4, %v973_v3 }
 0xa07   :  { %1205 = vmatprep.mubr.bf16.mxu1 %v977_v50 }
 0xa08   :  { %1206 = vmatmul.mubr.bf16.vlgmr.msra.gmra.mrb[12].mxu1 %v978_v48 }
 0xadb   :  { %v1207_v49 = vpop.f32.mrb[12].mxu1 }
 0xadc   :  { %v1043_v42 = vadd.f32 %v1207_v49, %v987_v17  ;;  %v1034_v45 = vpop.f32.mrb[13].mxu1 }
 0xadd   :  { %v1035_v62 = vadd.f32 %v1034_v45, %v987_v17  ;;  %v1208_v7 = vpop.f32.mrb[14].mxu1 }
 0xade   :  { %1051 = vst.msk [vmem:[#allocation8 + $0x10] sm:$0xff] %vm67_vm0, %v1043_v42  ;;  %v1046_v8 = vadd.f32 %v1208_v7, %v987_v17  ;;  %v1037_v10 = vpop.f32.mrb[15].mxu1 }
 0xadf   :  { %1049 = vst.msk [vmem:[#allocation8] sm:$0xff] %vm67_vm0, %v1035_v62  ;;  %v1038_v61 = vadd.f32 %v1037_v10, %v987_v17 }
 0xae0   :  { %1052 = vst.msk [vmem:[#allocation8 + $0x18] sm:$0xff] %vm67_vm0, %v1046_v8 }
 0xae1   :  { %1050 = vst.msk [vmem:[#allocation8 + $0x8] sm:$0xff] %vm67_vm0, %v1038_v61 }
 0xae2   :  { %1423 = shalt.err (!%p1420_p0)
}
 0xae3   :  { %s1424_s13 = scalar_lea.hbm %s1881_s4, 512 }
 0xae4   :  { %p1425_p1 = scmp.ne.s32.totalorder %s1881_s4, %s1424_s13  ;;  %p1428_p2 = scmp.lt.u32.totalorder %s1424_s13, %s1881_s4 }
 0xae6   :  { %p1430_p3 = pnand %p1428_p2, %p1425_p1 }
 0xae8   :  { %1433 = shalt.err (!%p1430_p3)
}
 0xae9   :  { %1064 = dma.vmem_to_hbm [thread:$0]  %s1059_s10, 512, %s1881_s4, [#allocation4], %s1442_s27, %s1442_s27, %s1443_s28  }
 0xaea   :  { %1438 = dma.done.wait [#allocation4], 512  }
 0xaeb   :  { %1439 = vsyncadd [#allocation4], 4294966784 }
 0xaec   :  { %1068 = vsyncpa [#allocation3], 1 }
 0xaed   :  { %1069 = vsyncpa [#allocation6], 1 }
 0xaee   :  { %1070 = vsyncpa [#allocation4], 1 }

</bundles_post_ra>
